<compile_context>
chip_gen: v6e
topology: v6e:2x2x1
jax: 0.10.0
libtpu: 0.0.40
codegen_flags: <defaults>
</compile_context>

<pallas_src>
import functools

import jax
import jax.numpy as jnp
from jax.experimental import pallas as pl
from jax.experimental.pallas import tpu as pltpu


# ----------------------------- Pallas kernel -------------------------------


def make_fused_lstm_kernel(num_layers, B, T, D, H):
    """Builds the fused kernel: all LSTM layers + FC head in one pallas_call.

    Ref layout (all whole-array VMEM, no grid):
      refs[0]              x        (T*B, D)    time-major flattened input
      refs[1 + 3l + 0]     W_ih^T   (D_l, 4H)   input -> gates (transposed)
      refs[1 + 3l + 1]     W_hh^T   (H, 4H)     hidden -> gates (transposed)
      refs[1 + 3l + 2]     bias     (1, 4H)     b_ih + b_hh
      refs[1 + 3L]         fc_w     (1, H)
      refs[2 + 3L]         fc_b     (1, 1)
      refs[3 + 3L]         out      (B, 1)      output
      refs[4 + 3L]         hseq     (T*B, H)    VMEM scratch (inter-layer seq)
    """

    def kernel(*refs):
        x_ref = refs[0]
        layer_refs = refs[1:1 + 3 * num_layers]
        fcw_ref = refs[1 + 3 * num_layers]
        fcb_ref = refs[2 + 3 * num_layers]
        out_ref = refs[3 + 3 * num_layers]
        hseq_ref = refs[4 + 3 * num_layers]          # VMEM scratch (T*B, H)

        f32 = jnp.float32

        # Lane mask selecting the cell-candidate ("g") gate columns [2H, 3H).
        # Hoisted once.  sigmoid(x) = 0.5*tanh(x/2) + 0.5, so non-g columns are
        # pre-scaled by 0.5 and fixed up after a single full-vreg tanh.
        lane = jax.lax.broadcasted_iota(jnp.int32, (B, 4 * H), 1)
        g_mask = (lane >= 2 * H) & (lane < 3 * H)
        pre_scale = jnp.where(g_mask, f32(1.0), f32(0.5))

        h_last = None
        for layer in range(num_layers):
            wihT = layer_refs[3 * layer + 0][...]    # (D_l, 4H)
            whhT = layer_refs[3 * layer + 1][...]    # (H, 4H)
            bias = layer_refs[3 * layer + 2][...]    # (1, 4H)

            # Layer input sequence, time-major rows (row = t*B + b).
            if layer == 0:
                seq_in = x_ref[...]                   # (T*B, D)
            else:
                seq_in = hseq_ref[...]                # (T*B, H) from prev layer

            # Hoisted projection with the bias folded in: one matmul + one
            # broadcast add per layer, off the serial recurrence chain.
            xg = jnp.dot(seq_in, wihT, preferred_element_type=f32) + bias  # (T*B, 4H)

            h = jnp.zeros((B, H), f32)
            c = jnp.zeros((B, H), f32)
            write_seq = layer < num_layers - 1
            for t in range(T):  # T small & static -> fully unrolled recurrence
                gates = xg[t * B:(t + 1) * B, :] + jnp.dot(
                    h, whhT, preferred_element_type=f32)                    # (B, 4H)
                tt = jnp.tanh(gates * pre_scale)      # single EUP pass over gates
                act = jnp.where(g_mask, tt, 0.5 * tt + 0.5)
                i_g = act[:, 0 * H:1 * H]
                f_g = act[:, 1 * H:2 * H]
                g_g = act[:, 2 * H:3 * H]
                o_g = act[:, 3 * H:4 * H]
                c = f_g * c + i_g * g_g
                h = o_g * jnp.tanh(c)
                if write_seq:
                    # Feed the next layer via VMEM scratch (no concatenate).
                    hseq_ref[pl.ds(t * B, B), :] = h
            h_last = h
            # Inter-layer dropout: identity at inference time.

        # FC head fused in: VPU multiply + reduce over H.
        out = jnp.sum(h_last * fcw_ref[...], axis=1, keepdims=True) + fcb_ref[...]
        out_ref[...] = out.astype(out_ref.dtype)

    return kernel


# ------------------------------ JAX wrapper ---------------------------------


@functools.partial(jax.jit, static_argnames=("num_layers",))
def lstm_model_forward(x, params, num_layers):
    """Full LSTMModel forward: x (B, T, input_size) -> (B,)."""
    B, T, D = x.shape
    H = params["lstm"][0][1].shape[0]

    # Time-major flattened input: row index = t*B + b.  One tiny wrapper-side
    # transpose so every layer (including layer 0) uses contiguous row slices.
    x_tm = jnp.transpose(x, (1, 0, 2)).reshape(T * B, D).astype(jnp.float32)

    flat_inputs = [x_tm]
    for layer in range(num_layers):
        flat_inputs.extend(params["lstm"][layer])
    flat_inputs.append(params["fc_w"])   # (1, H)
    flat_inputs.append(params["fc_b"])   # (1, 1)

    kernel = make_fused_lstm_kernel(num_layers, B, T, D, H)
    out = pl.pallas_call(
        kernel,
        out_shape=jax.ShapeDtypeStruct((B, 1), jnp.float32),
        in_specs=[pl.BlockSpec(memory_space=pltpu.MemorySpace.VMEM)
                  for _ in flat_inputs],
        out_specs=pl.BlockSpec(memory_space=pltpu.MemorySpace.VMEM),
        scratch_shapes=[pltpu.VMEM((T * B, H), jnp.float32)],
    )(*flat_inputs)
    return out[:, 0]  # squeeze(-1) -> (B,)


# --------------------------- parameter init / ref ---------------------------


def init_params(key, input_size, hidden_size, num_layers):
    """Deterministic PyTorch-style uniform(-1/sqrt(H), 1/sqrt(H)) init."""
    H = hidden_size
    bound = 1.0 / (H ** 0.5)
    lstm_params = []
    for layer in range(num_layers):
        d_in = input_size if layer == 0 else H
        key, k1, k2, k3, k4 = jax.random.split(key, 5)
        w_ih = jax.random.uniform(k1, (4 * H, d_in), jnp.float32, -bound, bound)
        w_hh = jax.random.uniform(k2, (4 * H, H), jnp.float32, -bound, bound)
        b_ih = jax.random.uniform(k3, (4 * H,), jnp.float32, -bound, bound)
        b_hh = jax.random.uniform(k4, (4 * H,), jnp.float32, -bound, bound)
        lstm_params.append((w_ih.T, w_hh.T, (b_ih + b_hh)[None, :]))
    key, k5, k6 = jax.random.split(key, 3)
    fc_w = jax.random.uniform(k5, (1, H), jnp.float32, -bound, bound)
    fc_b = jax.random.uniform(k6, (1,), jnp.float32, -bound, bound)
    return {"lstm": lstm_params, "fc_w": fc_w, "fc_b": fc_b[None, :]}


def lstm_model_reference(x, params, num_layers):
    """Pure-JAX reference (lax.scan) mirroring nn.LSTM + nn.Linear semantics."""
    B = x.shape[0]
    h_seq = jnp.transpose(x, (1, 0, 2)).astype(jnp.float32)  # (T, B, D)
    for layer in range(num_layers):
        wihT, whhT, b = params["lstm"][layer]
        H = whhT.shape[0]

        def step(carry, x_t):
            h, c = carry
            gates = x_t @ wihT + h @ whhT + b
            i_g = jax.nn.sigmoid(gates[:, 0 * H:1 * H])
            f_g = jax.nn.sigmoid(gates[:, 1 * H:2 * H])
            g_g = jnp.tanh(gates[:, 2 * H:3 * H])
            o_g = jax.nn.sigmoid(gates[:, 3 * H:4 * H])
            c_new = f_g * c + i_g * g_g
            h_new = o_g * jnp.tanh(c_new)
            return (h_new, c_new), h_new

        init = (jnp.zeros((B, H), jnp.float32), jnp.zeros((B, H), jnp.float32))
        _, h_seq = jax.lax.scan(step, init, h_seq)
    out = h_seq[-1] @ params["fc_w"].T + params["fc_b"]   # (B, 1)
    return out[:, 0]


# ---------------------------------- main ------------------------------------

if __name__ == "__main__":
    # Small shapes consistent with the module's forward:
    #   x: (batch=2, seq_len=8, input_size=6), hidden_size=32, num_layers=2
    B, T, INPUT_SIZE, HIDDEN_SIZE, NUM_LAYERS = 2, 8, 6, 32, 2

    key = jax.random.PRNGKey(0)
    key, kx, kp = jax.random.split(key, 3)
    x = jax.random.normal(kx, (B, T, INPUT_SIZE), dtype=jnp.float32)
    params = init_params(kp, INPUT_SIZE, HIDDEN_SIZE, NUM_LAYERS)

    out = lstm_model_forward(x, params, NUM_LAYERS)
    out = jax.block_until_ready(out)
    assert out.shape == (B,), out.shape

    ref = lstm_model_reference(x, params, NUM_LAYERS)
    assert jnp.allclose(out, ref, atol=1e-4, rtol=1e-4), (out, ref)

    print("KERNEL_OK")
</pallas_src>

<mosaic_0001>
module attributes {stable_mosaic.version = 11 : i64} {
  func.func @kernel(%arg0: memref<16x6xf32, #tpu.memory_space<vmem>>, %arg1: memref<6x128xf32, #tpu.memory_space<vmem>>, %arg2: memref<32x128xf32, #tpu.memory_space<vmem>>, %arg3: memref<1x128xf32, #tpu.memory_space<vmem>>, %arg4: memref<32x128xf32, #tpu.memory_space<vmem>>, %arg5: memref<32x128xf32, #tpu.memory_space<vmem>>, %arg6: memref<1x128xf32, #tpu.memory_space<vmem>>, %arg7: memref<1x32xf32, #tpu.memory_space<vmem>>, %arg8: memref<1x1xf32, #tpu.memory_space<vmem>>, %arg9: memref<2x1xf32, #tpu.memory_space<vmem>>, %arg10: memref<16x32xf32, #tpu.memory_space<vmem>>) attributes {dimension_semantics = [], scalar_prefetch = 0 : i64, scratch_operands = 1 : i64, tpu.core_type = #tpu.core_type<tc>} {
    %0 = tpu.iota {dimensions = array<i32: 1>} : vector<2x128xi32>
    %c64_i32 = arith.constant 64 : i32
    %1 = vector.broadcast %c64_i32 : i32 to vector<2x128xi32>
    %2 = arith.cmpi sge, %0, %1 : vector<2x128xi32>
    %c96_i32 = arith.constant 96 : i32
    %3 = vector.broadcast %c96_i32 : i32 to vector<2x128xi32>
    %4 = arith.cmpi slt, %0, %3 : vector<2x128xi32>
    %5 = arith.andi %2, %4 : vector<2x128xi1>
    %cst = arith.constant 1.000000e+00 : f32
    %cst_0 = arith.constant 5.000000e-01 : f32
    %6 = vector.broadcast %cst : f32 to vector<2x128xf32>
    %7 = vector.broadcast %cst_0 : f32 to vector<2x128xf32>
    %8 = arith.select %5, %6, %7 : vector<2x128xi1>, vector<2x128xf32>
    %c0 = arith.constant 0 : index
    %c0_1 = arith.constant 0 : index
    %9 = vector.load %arg1[%c0, %c0_1] : memref<6x128xf32, #tpu.memory_space<vmem>>, vector<6x128xf32>
    %c0_2 = arith.constant 0 : index
    %c0_3 = arith.constant 0 : index
    %10 = vector.load %arg2[%c0_2, %c0_3] : memref<32x128xf32, #tpu.memory_space<vmem>>, vector<32x128xf32>
    %c0_4 = arith.constant 0 : index
    %c0_5 = arith.constant 0 : index
    %11 = vector.load %arg3[%c0_4, %c0_5] : memref<1x128xf32, #tpu.memory_space<vmem>>, vector<1x128xf32>
    %c0_6 = arith.constant 0 : index
    %c0_7 = arith.constant 0 : index
    %12 = vector.load %arg0[%c0_6, %c0_7] : memref<16x6xf32, #tpu.memory_space<vmem>>, vector<16x6xf32>
    %cst_8 = arith.constant dense<0.000000e+00> : vector<16x128xf32>
    %13 = tpu.matmul %12, %9, %cst_8 {dimension_numbers = #tpu.dot_dimension_numbers<[1], [0], [0], [1], [0, 0, 1, 1], [], []>} : vector<16x6xf32>, vector<6x128xf32>, vector<16x128xf32> -> vector<16x128xf32>
    %14 = vector.broadcast %11 : vector<1x128xf32> to vector<16x128xf32>
    %15 = arith.addf %13, %14 : vector<16x128xf32>
    %cst_9 = arith.constant 0.000000e+00 : f32
    %16 = vector.broadcast %cst_9 : f32 to vector<2x32xf32>
    %cst_10 = arith.constant 0.000000e+00 : f32
    %17 = vector.broadcast %cst_10 : f32 to vector<2x32xf32>
    %18 = vector.extract_strided_slice %15 {offsets = [0, 0], sizes = [2, 128], strides = [1, 1]} : vector<16x128xf32> to vector<2x128xf32>
    %cst_11 = arith.constant dense<0.000000e+00> : vector<2x128xf32>
    %19 = tpu.matmul %16, %10, %cst_11 {dimension_numbers = #tpu.dot_dimension_numbers<[1], [0], [0], [1], [0, 0, 1, 1], [], []>} : vector<2x32xf32>, vector<32x128xf32>, vector<2x128xf32> -> vector<2x128xf32>
    %20 = arith.addf %18, %19 : vector<2x128xf32>
    %21 = arith.mulf %20, %8 : vector<2x128xf32>
    %22 = math.tanh %21 : vector<2x128xf32>
    %cst_12 = arith.constant 5.000000e-01 : f32
    %23 = vector.broadcast %cst_12 : f32 to vector<2x128xf32>
    %24 = arith.mulf %23, %22 : vector<2x128xf32>
    %cst_13 = arith.constant 5.000000e-01 : f32
    %25 = vector.broadcast %cst_13 : f32 to vector<2x128xf32>
    %26 = arith.addf %24, %25 : vector<2x128xf32>
    %27 = arith.select %5, %22, %26 : vector<2x128xi1>, vector<2x128xf32>
    %28 = vector.extract_strided_slice %27 {offsets = [0, 0], sizes = [2, 32], strides = [1, 1]} : vector<2x128xf32> to vector<2x32xf32>
    %29 = vector.extract_strided_slice %27 {offsets = [0, 32], sizes = [2, 32], strides = [1, 1]} : vector<2x128xf32> to vector<2x32xf32>
    %30 = vector.extract_strided_slice %27 {offsets = [0, 64], sizes = [2, 32], strides = [1, 1]} : vector<2x128xf32> to vector<2x32xf32>
    %31 = vector.extract_strided_slice %27 {offsets = [0, 96], sizes = [2, 32], strides = [1, 1]} : vector<2x128xf32> to vector<2x32xf32>
    %32 = arith.mulf %29, %17 : vector<2x32xf32>
    %33 = arith.mulf %28, %30 : vector<2x32xf32>
    %34 = arith.addf %32, %33 : vector<2x32xf32>
    %35 = math.tanh %34 : vector<2x32xf32>
    %36 = arith.mulf %31, %35 : vector<2x32xf32>
    %c0_14 = arith.constant 0 : index
    %c0_15 = arith.constant 0 : index
    %37 = vector.load %arg10[%c0_14, %c0_15] : memref<16x32xf32, #tpu.memory_space<vmem>>, vector<2x32xf32>
    tpu.vector_store %arg10[%c0_14, %c0_15], %36 {strides = array<i32>} : memref<16x32xf32, #tpu.memory_space<vmem>>, vector<2x32xf32>,
    %38 = vector.extract_strided_slice %15 {offsets = [2, 0], sizes = [2, 128], strides = [1, 1]} : vector<16x128xf32> to vector<2x128xf32>
    %cst_16 = arith.constant dense<0.000000e+00> : vector<2x128xf32>
    %39 = tpu.matmul %36, %10, %cst_16 {dimension_numbers = #tpu.dot_dimension_numbers<[1], [0], [0], [1], [0, 0, 1, 1], [], []>} : vector<2x32xf32>, vector<32x128xf32>, vector<2x128xf32> -> vector<2x128xf32>
    %40 = arith.addf %38, %39 : vector<2x128xf32>
    %41 = arith.mulf %40, %8 : vector<2x128xf32>
    %42 = math.tanh %41 : vector<2x128xf32>
    %cst_17 = arith.constant 5.000000e-01 : f32
    %43 = vector.broadcast %cst_17 : f32 to vector<2x128xf32>
    %44 = arith.mulf %43, %42 : vector<2x128xf32>
    %cst_18 = arith.constant 5.000000e-01 : f32
    %45 = vector.broadcast %cst_18 : f32 to vector<2x128xf32>
    %46 = arith.addf %44, %45 : vector<2x128xf32>
    %47 = arith.select %5, %42, %46 : vector<2x128xi1>, vector<2x128xf32>
    %48 = vector.extract_strided_slice %47 {offsets = [0, 0], sizes = [2, 32], strides = [1, 1]} : vector<2x128xf32> to vector<2x32xf32>
    %49 = vector.extract_strided_slice %47 {offsets = [0, 32], sizes = [2, 32], strides = [1, 1]} : vector<2x128xf32> to vector<2x32xf32>
    %50 = vector.extract_strided_slice %47 {offsets = [0, 64], sizes = [2, 32], strides = [1, 1]} : vector<2x128xf32> to vector<2x32xf32>
    %51 = vector.extract_strided_slice %47 {offsets = [0, 96], sizes = [2, 32], strides = [1, 1]} : vector<2x128xf32> to vector<2x32xf32>
    %52 = arith.mulf %49, %34 : vector<2x32xf32>
    %53 = arith.mulf %48, %50 : vector<2x32xf32>
    %54 = arith.addf %52, %53 : vector<2x32xf32>
    %55 = math.tanh %54 : vector<2x32xf32>
    %56 = arith.mulf %51, %55 : vector<2x32xf32>
    %c2 = arith.constant 2 : index
    %c0_19 = arith.constant 0 : index
    %57 = vector.load %arg10[%c2, %c0_19] : memref<16x32xf32, #tpu.memory_space<vmem>>, vector<2x32xf32>
    tpu.vector_store %arg10[%c2, %c0_19], %56 {strides = array<i32>} : memref<16x32xf32, #tpu.memory_space<vmem>>, vector<2x32xf32>,
    %58 = vector.extract_strided_slice %15 {offsets = [4, 0], sizes = [2, 128], strides = [1, 1]} : vector<16x128xf32> to vector<2x128xf32>
    %cst_20 = arith.constant dense<0.000000e+00> : vector<2x128xf32>
    %59 = tpu.matmul %56, %10, %cst_20 {dimension_numbers = #tpu.dot_dimension_numbers<[1], [0], [0], [1], [0, 0, 1, 1], [], []>} : vector<2x32xf32>, vector<32x128xf32>, vector<2x128xf32> -> vector<2x128xf32>
    %60 = arith.addf %58, %59 : vector<2x128xf32>
    %61 = arith.mulf %60, %8 : vector<2x128xf32>
    %62 = math.tanh %61 : vector<2x128xf32>
    %cst_21 = arith.constant 5.000000e-01 : f32
    %63 = vector.broadcast %cst_21 : f32 to vector<2x128xf32>
    %64 = arith.mulf %63, %62 : vector<2x128xf32>
    %cst_22 = arith.constant 5.000000e-01 : f32
    %65 = vector.broadcast %cst_22 : f32 to vector<2x128xf32>
    %66 = arith.addf %64, %65 : vector<2x128xf32>
    %67 = arith.select %5, %62, %66 : vector<2x128xi1>, vector<2x128xf32>
    %68 = vector.extract_strided_slice %67 {offsets = [0, 0], sizes = [2, 32], strides = [1, 1]} : vector<2x128xf32> to vector<2x32xf32>
    %69 = vector.extract_strided_slice %67 {offsets = [0, 32], sizes = [2, 32], strides = [1, 1]} : vector<2x128xf32> to vector<2x32xf32>
    %70 = vector.extract_strided_slice %67 {offsets = [0, 64], sizes = [2, 32], strides = [1, 1]} : vector<2x128xf32> to vector<2x32xf32>
    %71 = vector.extract_strided_slice %67 {offsets = [0, 96], sizes = [2, 32], strides = [1, 1]} : vector<2x128xf32> to vector<2x32xf32>
    %72 = arith.mulf %69, %54 : vector<2x32xf32>
    %73 = arith.mulf %68, %70 : vector<2x32xf32>
    %74 = arith.addf %72, %73 : vector<2x32xf32>
    %75 = math.tanh %74 : vector<2x32xf32>
    %76 = arith.mulf %71, %75 : vector<2x32xf32>
    %c4 = arith.constant 4 : index
    %c0_23 = arith.constant 0 : index
    %77 = vector.load %arg10[%c4, %c0_23] : memref<16x32xf32, #tpu.memory_space<vmem>>, vector<2x32xf32>
    tpu.vector_store %arg10[%c4, %c0_23], %76 {strides = array<i32>} : memref<16x32xf32, #tpu.memory_space<vmem>>, vector<2x32xf32>,
    %78 = vector.extract_strided_slice %15 {offsets = [6, 0], sizes = [2, 128], strides = [1, 1]} : vector<16x128xf32> to vector<2x128xf32>
    %cst_24 = arith.constant dense<0.000000e+00> : vector<2x128xf32>
    %79 = tpu.matmul %76, %10, %cst_24 {dimension_numbers = #tpu.dot_dimension_numbers<[1], [0], [0], [1], [0, 0, 1, 1], [], []>} : vector<2x32xf32>, vector<32x128xf32>, vector<2x128xf32> -> vector<2x128xf32>
    %80 = arith.addf %78, %79 : vector<2x128xf32>
    %81 = arith.mulf %80, %8 : vector<2x128xf32>
    %82 = math.tanh %81 : vector<2x128xf32>
    %cst_25 = arith.constant 5.000000e-01 : f32
    %83 = vector.broadcast %cst_25 : f32 to vector<2x128xf32>
    %84 = arith.mulf %83, %82 : vector<2x128xf32>
    %cst_26 = arith.constant 5.000000e-01 : f32
    %85 = vector.broadcast %cst_26 : f32 to vector<2x128xf32>
    %86 = arith.addf %84, %85 : vector<2x128xf32>
    %87 = arith.select %5, %82, %86 : vector<2x128xi1>, vector<2x128xf32>
    %88 = vector.extract_strided_slice %87 {offsets = [0, 0], sizes = [2, 32], strides = [1, 1]} : vector<2x128xf32> to vector<2x32xf32>
    %89 = vector.extract_strided_slice %87 {offsets = [0, 32], sizes = [2, 32], strides = [1, 1]} : vector<2x128xf32> to vector<2x32xf32>
    %90 = vector.extract_strided_slice %87 {offsets = [0, 64], sizes = [2, 32], strides = [1, 1]} : vector<2x128xf32> to vector<2x32xf32>
    %91 = vector.extract_strided_slice %87 {offsets = [0, 96], sizes = [2, 32], strides = [1, 1]} : vector<2x128xf32> to vector<2x32xf32>
    %92 = arith.mulf %89, %74 : vector<2x32xf32>
    %93 = arith.mulf %88, %90 : vector<2x32xf32>
    %94 = arith.addf %92, %93 : vector<2x32xf32>
    %95 = math.tanh %94 : vector<2x32xf32>
    %96 = arith.mulf %91, %95 : vector<2x32xf32>
    %c6 = arith.constant 6 : index
    %c0_27 = arith.constant 0 : index
    %97 = vector.load %arg10[%c6, %c0_27] : memref<16x32xf32, #tpu.memory_space<vmem>>, vector<2x32xf32>
    tpu.vector_store %arg10[%c6, %c0_27], %96 {strides = array<i32>} : memref<16x32xf32, #tpu.memory_space<vmem>>, vector<2x32xf32>,
    %98 = vector.extract_strided_slice %15 {offsets = [8, 0], sizes = [2, 128], strides = [1, 1]} : vector<16x128xf32> to vector<2x128xf32>
    %cst_28 = arith.constant dense<0.000000e+00> : vector<2x128xf32>
    %99 = tpu.matmul %96, %10, %cst_28 {dimension_numbers = #tpu.dot_dimension_numbers<[1], [0], [0], [1], [0, 0, 1, 1], [], []>} : vector<2x32xf32>, vector<32x128xf32>, vector<2x128xf32> -> vector<2x128xf32>
    %100 = arith.addf %98, %99 : vector<2x128xf32>
    %101 = arith.mulf %100, %8 : vector<2x128xf32>
    %102 = math.tanh %101 : vector<2x128xf32>
    %cst_29 = arith.constant 5.000000e-01 : f32
    %103 = vector.broadcast %cst_29 : f32 to vector<2x128xf32>
    %104 = arith.mulf %103, %102 : vector<2x128xf32>
    %cst_30 = arith.constant 5.000000e-01 : f32
    %105 = vector.broadcast %cst_30 : f32 to vector<2x128xf32>
    %106 = arith.addf %104, %105 : vector<2x128xf32>
    %107 = arith.select %5, %102, %106 : vector<2x128xi1>, vector<2x128xf32>
    %108 = vector.extract_strided_slice %107 {offsets = [0, 0], sizes = [2, 32], strides = [1, 1]} : vector<2x128xf32> to vector<2x32xf32>
    %109 = vector.extract_strided_slice %107 {offsets = [0, 32], sizes = [2, 32], strides = [1, 1]} : vector<2x128xf32> to vector<2x32xf32>
    %110 = vector.extract_strided_slice %107 {offsets = [0, 64], sizes = [2, 32], strides = [1, 1]} : vector<2x128xf32> to vector<2x32xf32>
    %111 = vector.extract_strided_slice %107 {offsets = [0, 96], sizes = [2, 32], strides = [1, 1]} : vector<2x128xf32> to vector<2x32xf32>
    %112 = arith.mulf %109, %94 : vector<2x32xf32>
    %113 = arith.mulf %108, %110 : vector<2x32xf32>
    %114 = arith.addf %112, %113 : vector<2x32xf32>
    %115 = math.tanh %114 : vector<2x32xf32>
    %116 = arith.mulf %111, %115 : vector<2x32xf32>
    %c8 = arith.constant 8 : index
    %c0_31 = arith.constant 0 : index
    %117 = vector.load %arg10[%c8, %c0_31] : memref<16x32xf32, #tpu.memory_space<vmem>>, vector<2x32xf32>
    tpu.vector_store %arg10[%c8, %c0_31], %116 {strides = array<i32>} : memref<16x32xf32, #tpu.memory_space<vmem>>, vector<2x32xf32>,
    %118 = vector.extract_strided_slice %15 {offsets = [10, 0], sizes = [2, 128], strides = [1, 1]} : vector<16x128xf32> to vector<2x128xf32>
    %cst_32 = arith.constant dense<0.000000e+00> : vector<2x128xf32>
    %119 = tpu.matmul %116, %10, %cst_32 {dimension_numbers = #tpu.dot_dimension_numbers<[1], [0], [0], [1], [0, 0, 1, 1], [], []>} : vector<2x32xf32>, vector<32x128xf32>, vector<2x128xf32> -> vector<2x128xf32>
    %120 = arith.addf %118, %119 : vector<2x128xf32>
    %121 = arith.mulf %120, %8 : vector<2x128xf32>
    %122 = math.tanh %121 : vector<2x128xf32>
    %cst_33 = arith.constant 5.000000e-01 : f32
    %123 = vector.broadcast %cst_33 : f32 to vector<2x128xf32>
    %124 = arith.mulf %123, %122 : vector<2x128xf32>
    %cst_34 = arith.constant 5.000000e-01 : f32
    %125 = vector.broadcast %cst_34 : f32 to vector<2x128xf32>
    %126 = arith.addf %124, %125 : vector<2x128xf32>
    %127 = arith.select %5, %122, %126 : vector<2x128xi1>, vector<2x128xf32>
    %128 = vector.extract_strided_slice %127 {offsets = [0, 0], sizes = [2, 32], strides = [1, 1]} : vector<2x128xf32> to vector<2x32xf32>
    %129 = vector.extract_strided_slice %127 {offsets = [0, 32], sizes = [2, 32], strides = [1, 1]} : vector<2x128xf32> to vector<2x32xf32>
    %130 = vector.extract_strided_slice %127 {offsets = [0, 64], sizes = [2, 32], strides = [1, 1]} : vector<2x128xf32> to vector<2x32xf32>
    %131 = vector.extract_strided_slice %127 {offsets = [0, 96], sizes = [2, 32], strides = [1, 1]} : vector<2x128xf32> to vector<2x32xf32>
    %132 = arith.mulf %129, %114 : vector<2x32xf32>
    %133 = arith.mulf %128, %130 : vector<2x32xf32>
    %134 = arith.addf %132, %133 : vector<2x32xf32>
    %135 = math.tanh %134 : vector<2x32xf32>
    %136 = arith.mulf %131, %135 : vector<2x32xf32>
    %c10 = arith.constant 10 : index
    %c0_35 = arith.constant 0 : index
    %137 = vector.load %arg10[%c10, %c0_35] : memref<16x32xf32, #tpu.memory_space<vmem>>, vector<2x32xf32>
    tpu.vector_store %arg10[%c10, %c0_35], %136 {strides = array<i32>} : memref<16x32xf32, #tpu.memory_space<vmem>>, vector<2x32xf32>,
    %138 = vector.extract_strided_slice %15 {offsets = [12, 0], sizes = [2, 128], strides = [1, 1]} : vector<16x128xf32> to vector<2x128xf32>
    %cst_36 = arith.constant dense<0.000000e+00> : vector<2x128xf32>
    %139 = tpu.matmul %136, %10, %cst_36 {dimension_numbers = #tpu.dot_dimension_numbers<[1], [0], [0], [1], [0, 0, 1, 1], [], []>} : vector<2x32xf32>, vector<32x128xf32>, vector<2x128xf32> -> vector<2x128xf32>
    %140 = arith.addf %138, %139 : vector<2x128xf32>
    %141 = arith.mulf %140, %8 : vector<2x128xf32>
    %142 = math.tanh %141 : vector<2x128xf32>
    %cst_37 = arith.constant 5.000000e-01 : f32
    %143 = vector.broadcast %cst_37 : f32 to vector<2x128xf32>
    %144 = arith.mulf %143, %142 : vector<2x128xf32>
    %cst_38 = arith.constant 5.000000e-01 : f32
    %145 = vector.broadcast %cst_38 : f32 to vector<2x128xf32>
    %146 = arith.addf %144, %145 : vector<2x128xf32>
    %147 = arith.select %5, %142, %146 : vector<2x128xi1>, vector<2x128xf32>
    %148 = vector.extract_strided_slice %147 {offsets = [0, 0], sizes = [2, 32], strides = [1, 1]} : vector<2x128xf32> to vector<2x32xf32>
    %149 = vector.extract_strided_slice %147 {offsets = [0, 32], sizes = [2, 32], strides = [1, 1]} : vector<2x128xf32> to vector<2x32xf32>
    %150 = vector.extract_strided_slice %147 {offsets = [0, 64], sizes = [2, 32], strides = [1, 1]} : vector<2x128xf32> to vector<2x32xf32>
    %151 = vector.extract_strided_slice %147 {offsets = [0, 96], sizes = [2, 32], strides = [1, 1]} : vector<2x128xf32> to vector<2x32xf32>
    %152 = arith.mulf %149, %134 : vector<2x32xf32>
    %153 = arith.mulf %148, %150 : vector<2x32xf32>
    %154 = arith.addf %152, %153 : vector<2x32xf32>
    %155 = math.tanh %154 : vector<2x32xf32>
    %156 = arith.mulf %151, %155 : vector<2x32xf32>
    %c12 = arith.constant 12 : index
    %c0_39 = arith.constant 0 : index
    %157 = vector.load %arg10[%c12, %c0_39] : memref<16x32xf32, #tpu.memory_space<vmem>>, vector<2x32xf32>
    tpu.vector_store %arg10[%c12, %c0_39], %156 {strides = array<i32>} : memref<16x32xf32, #tpu.memory_space<vmem>>, vector<2x32xf32>,
    %158 = vector.extract_strided_slice %15 {offsets = [14, 0], sizes = [2, 128], strides = [1, 1]} : vector<16x128xf32> to vector<2x128xf32>
    %cst_40 = arith.constant dense<0.000000e+00> : vector<2x128xf32>
    %159 = tpu.matmul %156, %10, %cst_40 {dimension_numbers = #tpu.dot_dimension_numbers<[1], [0], [0], [1], [0, 0, 1, 1], [], []>} : vector<2x32xf32>, vector<32x128xf32>, vector<2x128xf32> -> vector<2x128xf32>
    %160 = arith.addf %158, %159 : vector<2x128xf32>
    %161 = arith.mulf %160, %8 : vector<2x128xf32>
    %162 = math.tanh %161 : vector<2x128xf32>
    %cst_41 = arith.constant 5.000000e-01 : f32
    %163 = vector.broadcast %cst_41 : f32 to vector<2x128xf32>
    %164 = arith.mulf %163, %162 : vector<2x128xf32>
    %cst_42 = arith.constant 5.000000e-01 : f32
    %165 = vector.broadcast %cst_42 : f32 to vector<2x128xf32>
    %166 = arith.addf %164, %165 : vector<2x128xf32>
    %167 = arith.select %5, %162, %166 : vector<2x128xi1>, vector<2x128xf32>
    %168 = vector.extract_strided_slice %167 {offsets = [0, 0], sizes = [2, 32], strides = [1, 1]} : vector<2x128xf32> to vector<2x32xf32>
    %169 = vector.extract_strided_slice %167 {offsets = [0, 32], sizes = [2, 32], strides = [1, 1]} : vector<2x128xf32> to vector<2x32xf32>
    %170 = vector.extract_strided_slice %167 {offsets = [0, 64], sizes = [2, 32], strides = [1, 1]} : vector<2x128xf32> to vector<2x32xf32>
    %171 = vector.extract_strided_slice %167 {offsets = [0, 96], sizes = [2, 32], strides = [1, 1]} : vector<2x128xf32> to vector<2x32xf32>
    %172 = arith.mulf %169, %154 : vector<2x32xf32>
    %173 = arith.mulf %168, %170 : vector<2x32xf32>
    %174 = arith.addf %172, %173 : vector<2x32xf32>
    %175 = math.tanh %174 : vector<2x32xf32>
    %176 = arith.mulf %171, %175 : vector<2x32xf32>
    %c14 = arith.constant 14 : index
    %c0_43 = arith.constant 0 : index
    %177 = vector.load %arg10[%c14, %c0_43] : memref<16x32xf32, #tpu.memory_space<vmem>>, vector<2x32xf32>
    tpu.vector_store %arg10[%c14, %c0_43], %176 {strides = array<i32>} : memref<16x32xf32, #tpu.memory_space<vmem>>, vector<2x32xf32>,
    %c0_44 = arith.constant 0 : index
    %c0_45 = arith.constant 0 : index
    %178 = vector.load %arg4[%c0_44, %c0_45] : memref<32x128xf32, #tpu.memory_space<vmem>>, vector<32x128xf32>
    %c0_46 = arith.constant 0 : index
    %c0_47 = arith.constant 0 : index
    %179 = vector.load %arg5[%c0_46, %c0_47] : memref<32x128xf32, #tpu.memory_space<vmem>>, vector<32x128xf32>
    %c0_48 = arith.constant 0 : index
    %c0_49 = arith.constant 0 : index
    %180 = vector.load %arg6[%c0_48, %c0_49] : memref<1x128xf32, #tpu.memory_space<vmem>>, vector<1x128xf32>
    %c0_50 = arith.constant 0 : index
    %c0_51 = arith.constant 0 : index
    %181 = vector.load %arg10[%c0_50, %c0_51] : memref<16x32xf32, #tpu.memory_space<vmem>>, vector<16x32xf32>
    %cst_52 = arith.constant dense<0.000000e+00> : vector<16x128xf32>
    %182 = tpu.matmul %181, %178, %cst_52 {dimension_numbers = #tpu.dot_dimension_numbers<[1], [0], [0], [1], [0, 0, 1, 1], [], []>} : vector<16x32xf32>, vector<32x128xf32>, vector<16x128xf32> -> vector<16x128xf32>
    %183 = vector.broadcast %180 : vector<1x128xf32> to vector<16x128xf32>
    %184 = arith.addf %182, %183 : vector<16x128xf32>
    %cst_53 = arith.constant 0.000000e+00 : f32
    %185 = vector.broadcast %cst_53 : f32 to vector<2x32xf32>
    %cst_54 = arith.constant 0.000000e+00 : f32
    %186 = vector.broadcast %cst_54 : f32 to vector<2x32xf32>
    %187 = vector.extract_strided_slice %184 {offsets = [0, 0], sizes = [2, 128], strides = [1, 1]} : vector<16x128xf32> to vector<2x128xf32>
    %cst_55 = arith.constant dense<0.000000e+00> : vector<2x128xf32>
    %188 = tpu.matmul %185, %179, %cst_55 {dimension_numbers = #tpu.dot_dimension_numbers<[1], [0], [0], [1], [0, 0, 1, 1], [], []>} : vector<2x32xf32>, vector<32x128xf32>, vector<2x128xf32> -> vector<2x128xf32>
    %189 = arith.addf %187, %188 : vector<2x128xf32>
    %190 = arith.mulf %189, %8 : vector<2x128xf32>
    %191 = math.tanh %190 : vector<2x128xf32>
    %cst_56 = arith.constant 5.000000e-01 : f32
    %192 = vector.broadcast %cst_56 : f32 to vector<2x128xf32>
    %193 = arith.mulf %192, %191 : vector<2x128xf32>
    %cst_57 = arith.constant 5.000000e-01 : f32
    %194 = vector.broadcast %cst_57 : f32 to vector<2x128xf32>
    %195 = arith.addf %193, %194 : vector<2x128xf32>
    %196 = arith.select %5, %191, %195 : vector<2x128xi1>, vector<2x128xf32>
    %197 = vector.extract_strided_slice %196 {offsets = [0, 0], sizes = [2, 32], strides = [1, 1]} : vector<2x128xf32> to vector<2x32xf32>
    %198 = vector.extract_strided_slice %196 {offsets = [0, 32], sizes = [2, 32], strides = [1, 1]} : vector<2x128xf32> to vector<2x32xf32>
    %199 = vector.extract_strided_slice %196 {offsets = [0, 64], sizes = [2, 32], strides = [1, 1]} : vector<2x128xf32> to vector<2x32xf32>
    %200 = vector.extract_strided_slice %196 {offsets = [0, 96], sizes = [2, 32], strides = [1, 1]} : vector<2x128xf32> to vector<2x32xf32>
    %201 = arith.mulf %198, %186 : vector<2x32xf32>
    %202 = arith.mulf %197, %199 : vector<2x32xf32>
    %203 = arith.addf %201, %202 : vector<2x32xf32>
    %204 = math.tanh %203 : vector<2x32xf32>
    %205 = arith.mulf %200, %204 : vector<2x32xf32>
    %206 = vector.extract_strided_slice %184 {offsets = [2, 0], sizes = [2, 128], strides = [1, 1]} : vector<16x128xf32> to vector<2x128xf32>
    %cst_58 = arith.constant dense<0.000000e+00> : vector<2x128xf32>
    %207 = tpu.matmul %205, %179, %cst_58 {dimension_numbers = #tpu.dot_dimension_numbers<[1], [0], [0], [1], [0, 0, 1, 1], [], []>} : vector<2x32xf32>, vector<32x128xf32>, vector<2x128xf32> -> vector<2x128xf32>
    %208 = arith.addf %206, %207 : vector<2x128xf32>
    %209 = arith.mulf %208, %8 : vector<2x128xf32>
    %210 = math.tanh %209 : vector<2x128xf32>
    %cst_59 = arith.constant 5.000000e-01 : f32
    %211 = vector.broadcast %cst_59 : f32 to vector<2x128xf32>
    %212 = arith.mulf %211, %210 : vector<2x128xf32>
    %cst_60 = arith.constant 5.000000e-01 : f32
    %213 = vector.broadcast %cst_60 : f32 to vector<2x128xf32>
    %214 = arith.addf %212, %213 : vector<2x128xf32>
    %215 = arith.select %5, %210, %214 : vector<2x128xi1>, vector<2x128xf32>
    %216 = vector.extract_strided_slice %215 {offsets = [0, 0], sizes = [2, 32], strides = [1, 1]} : vector<2x128xf32> to vector<2x32xf32>
    %217 = vector.extract_strided_slice %215 {offsets = [0, 32], sizes = [2, 32], strides = [1, 1]} : vector<2x128xf32> to vector<2x32xf32>
    %218 = vector.extract_strided_slice %215 {offsets = [0, 64], sizes = [2, 32], strides = [1, 1]} : vector<2x128xf32> to vector<2x32xf32>
    %219 = vector.extract_strided_slice %215 {offsets = [0, 96], sizes = [2, 32], strides = [1, 1]} : vector<2x128xf32> to vector<2x32xf32>
    %220 = arith.mulf %217, %203 : vector<2x32xf32>
    %221 = arith.mulf %216, %218 : vector<2x32xf32>
    %222 = arith.addf %220, %221 : vector<2x32xf32>
    %223 = math.tanh %222 : vector<2x32xf32>
    %224 = arith.mulf %219, %223 : vector<2x32xf32>
    %225 = vector.extract_strided_slice %184 {offsets = [4, 0], sizes = [2, 128], strides = [1, 1]} : vector<16x128xf32> to vector<2x128xf32>
    %cst_61 = arith.constant dense<0.000000e+00> : vector<2x128xf32>
    %226 = tpu.matmul %224, %179, %cst_61 {dimension_numbers = #tpu.dot_dimension_numbers<[1], [0], [0], [1], [0, 0, 1, 1], [], []>} : vector<2x32xf32>, vector<32x128xf32>, vector<2x128xf32> -> vector<2x128xf32>
    %227 = arith.addf %225, %226 : vector<2x128xf32>
    %228 = arith.mulf %227, %8 : vector<2x128xf32>
    %229 = math.tanh %228 : vector<2x128xf32>
    %cst_62 = arith.constant 5.000000e-01 : f32
    %230 = vector.broadcast %cst_62 : f32 to vector<2x128xf32>
    %231 = arith.mulf %230, %229 : vector<2x128xf32>
    %cst_63 = arith.constant 5.000000e-01 : f32
    %232 = vector.broadcast %cst_63 : f32 to vector<2x128xf32>
    %233 = arith.addf %231, %232 : vector<2x128xf32>
    %234 = arith.select %5, %229, %233 : vector<2x128xi1>, vector<2x128xf32>
    %235 = vector.extract_strided_slice %234 {offsets = [0, 0], sizes = [2, 32], strides = [1, 1]} : vector<2x128xf32> to vector<2x32xf32>
    %236 = vector.extract_strided_slice %234 {offsets = [0, 32], sizes = [2, 32], strides = [1, 1]} : vector<2x128xf32> to vector<2x32xf32>
    %237 = vector.extract_strided_slice %234 {offsets = [0, 64], sizes = [2, 32], strides = [1, 1]} : vector<2x128xf32> to vector<2x32xf32>
    %238 = vector.extract_strided_slice %234 {offsets = [0, 96], sizes = [2, 32], strides = [1, 1]} : vector<2x128xf32> to vector<2x32xf32>
    %239 = arith.mulf %236, %222 : vector<2x32xf32>
    %240 = arith.mulf %235, %237 : vector<2x32xf32>
    %241 = arith.addf %239, %240 : vector<2x32xf32>
    %242 = math.tanh %241 : vector<2x32xf32>
    %243 = arith.mulf %238, %242 : vector<2x32xf32>
    %244 = vector.extract_strided_slice %184 {offsets = [6, 0], sizes = [2, 128], strides = [1, 1]} : vector<16x128xf32> to vector<2x128xf32>
    %cst_64 = arith.constant dense<0.000000e+00> : vector<2x128xf32>
    %245 = tpu.matmul %243, %179, %cst_64 {dimension_numbers = #tpu.dot_dimension_numbers<[1], [0], [0], [1], [0, 0, 1, 1], [], []>} : vector<2x32xf32>, vector<32x128xf32>, vector<2x128xf32> -> vector<2x128xf32>
    %246 = arith.addf %244, %245 : vector<2x128xf32>
    %247 = arith.mulf %246, %8 : vector<2x128xf32>
    %248 = math.tanh %247 : vector<2x128xf32>
    %cst_65 = arith.constant 5.000000e-01 : f32
    %249 = vector.broadcast %cst_65 : f32 to vector<2x128xf32>
    %250 = arith.mulf %249, %248 : vector<2x128xf32>
    %cst_66 = arith.constant 5.000000e-01 : f32
    %251 = vector.broadcast %cst_66 : f32 to vector<2x128xf32>
    %252 = arith.addf %250, %251 : vector<2x128xf32>
    %253 = arith.select %5, %248, %252 : vector<2x128xi1>, vector<2x128xf32>
    %254 = vector.extract_strided_slice %253 {offsets = [0, 0], sizes = [2, 32], strides = [1, 1]} : vector<2x128xf32> to vector<2x32xf32>
    %255 = vector.extract_strided_slice %253 {offsets = [0, 32], sizes = [2, 32], strides = [1, 1]} : vector<2x128xf32> to vector<2x32xf32>
    %256 = vector.extract_strided_slice %253 {offsets = [0, 64], sizes = [2, 32], strides = [1, 1]} : vector<2x128xf32> to vector<2x32xf32>
    %257 = vector.extract_strided_slice %253 {offsets = [0, 96], sizes = [2, 32], strides = [1, 1]} : vector<2x128xf32> to vector<2x32xf32>
    %258 = arith.mulf %255, %241 : vector<2x32xf32>
    %259 = arith.mulf %254, %256 : vector<2x32xf32>
    %260 = arith.addf %258, %259 : vector<2x32xf32>
    %261 = math.tanh %260 : vector<2x32xf32>
    %262 = arith.mulf %257, %261 : vector<2x32xf32>
    %263 = vector.extract_strided_slice %184 {offsets = [8, 0], sizes = [2, 128], strides = [1, 1]} : vector<16x128xf32> to vector<2x128xf32>
    %cst_67 = arith.constant dense<0.000000e+00> : vector<2x128xf32>
    %264 = tpu.matmul %262, %179, %cst_67 {dimension_numbers = #tpu.dot_dimension_numbers<[1], [0], [0], [1], [0, 0, 1, 1], [], []>} : vector<2x32xf32>, vector<32x128xf32>, vector<2x128xf32> -> vector<2x128xf32>
    %265 = arith.addf %263, %264 : vector<2x128xf32>
    %266 = arith.mulf %265, %8 : vector<2x128xf32>
    %267 = math.tanh %266 : vector<2x128xf32>
    %cst_68 = arith.constant 5.000000e-01 : f32
    %268 = vector.broadcast %cst_68 : f32 to vector<2x128xf32>
    %269 = arith.mulf %268, %267 : vector<2x128xf32>
    %cst_69 = arith.constant 5.000000e-01 : f32
    %270 = vector.broadcast %cst_69 : f32 to vector<2x128xf32>
    %271 = arith.addf %269, %270 : vector<2x128xf32>
    %272 = arith.select %5, %267, %271 : vector<2x128xi1>, vector<2x128xf32>
    %273 = vector.extract_strided_slice %272 {offsets = [0, 0], sizes = [2, 32], strides = [1, 1]} : vector<2x128xf32> to vector<2x32xf32>
    %274 = vector.extract_strided_slice %272 {offsets = [0, 32], sizes = [2, 32], strides = [1, 1]} : vector<2x128xf32> to vector<2x32xf32>
    %275 = vector.extract_strided_slice %272 {offsets = [0, 64], sizes = [2, 32], strides = [1, 1]} : vector<2x128xf32> to vector<2x32xf32>
    %276 = vector.extract_strided_slice %272 {offsets = [0, 96], sizes = [2, 32], strides = [1, 1]} : vector<2x128xf32> to vector<2x32xf32>
    %277 = arith.mulf %274, %260 : vector<2x32xf32>
    %278 = arith.mulf %273, %275 : vector<2x32xf32>
    %279 = arith.addf %277, %278 : vector<2x32xf32>
    %280 = math.tanh %279 : vector<2x32xf32>
    %281 = arith.mulf %276, %280 : vector<2x32xf32>
    %282 = vector.extract_strided_slice %184 {offsets = [10, 0], sizes = [2, 128], strides = [1, 1]} : vector<16x128xf32> to vector<2x128xf32>
    %cst_70 = arith.constant dense<0.000000e+00> : vector<2x128xf32>
    %283 = tpu.matmul %281, %179, %cst_70 {dimension_numbers = #tpu.dot_dimension_numbers<[1], [0], [0], [1], [0, 0, 1, 1], [], []>} : vector<2x32xf32>, vector<32x128xf32>, vector<2x128xf32> -> vector<2x128xf32>
    %284 = arith.addf %282, %283 : vector<2x128xf32>
    %285 = arith.mulf %284, %8 : vector<2x128xf32>
    %286 = math.tanh %285 : vector<2x128xf32>
    %cst_71 = arith.constant 5.000000e-01 : f32
    %287 = vector.broadcast %cst_71 : f32 to vector<2x128xf32>
    %288 = arith.mulf %287, %286 : vector<2x128xf32>
    %cst_72 = arith.constant 5.000000e-01 : f32
    %289 = vector.broadcast %cst_72 : f32 to vector<2x128xf32>
    %290 = arith.addf %288, %289 : vector<2x128xf32>
    %291 = arith.select %5, %286, %290 : vector<2x128xi1>, vector<2x128xf32>
    %292 = vector.extract_strided_slice %291 {offsets = [0, 0], sizes = [2, 32], strides = [1, 1]} : vector<2x128xf32> to vector<2x32xf32>
    %293 = vector.extract_strided_slice %291 {offsets = [0, 32], sizes = [2, 32], strides = [1, 1]} : vector<2x128xf32> to vector<2x32xf32>
    %294 = vector.extract_strided_slice %291 {offsets = [0, 64], sizes = [2, 32], strides = [1, 1]} : vector<2x128xf32> to vector<2x32xf32>
    %295 = vector.extract_strided_slice %291 {offsets = [0, 96], sizes = [2, 32], strides = [1, 1]} : vector<2x128xf32> to vector<2x32xf32>
    %296 = arith.mulf %293, %279 : vector<2x32xf32>
    %297 = arith.mulf %292, %294 : vector<2x32xf32>
    %298 = arith.addf %296, %297 : vector<2x32xf32>
    %299 = math.tanh %298 : vector<2x32xf32>
    %300 = arith.mulf %295, %299 : vector<2x32xf32>
    %301 = vector.extract_strided_slice %184 {offsets = [12, 0], sizes = [2, 128], strides = [1, 1]} : vector<16x128xf32> to vector<2x128xf32>
    %cst_73 = arith.constant dense<0.000000e+00> : vector<2x128xf32>
    %302 = tpu.matmul %300, %179, %cst_73 {dimension_numbers = #tpu.dot_dimension_numbers<[1], [0], [0], [1], [0, 0, 1, 1], [], []>} : vector<2x32xf32>, vector<32x128xf32>, vector<2x128xf32> -> vector<2x128xf32>
    %303 = arith.addf %301, %302 : vector<2x128xf32>
    %304 = arith.mulf %303, %8 : vector<2x128xf32>
    %305 = math.tanh %304 : vector<2x128xf32>
    %cst_74 = arith.constant 5.000000e-01 : f32
    %306 = vector.broadcast %cst_74 : f32 to vector<2x128xf32>
    %307 = arith.mulf %306, %305 : vector<2x128xf32>
    %cst_75 = arith.constant 5.000000e-01 : f32
    %308 = vector.broadcast %cst_75 : f32 to vector<2x128xf32>
    %309 = arith.addf %307, %308 : vector<2x128xf32>
    %310 = arith.select %5, %305, %309 : vector<2x128xi1>, vector<2x128xf32>
    %311 = vector.extract_strided_slice %310 {offsets = [0, 0], sizes = [2, 32], strides = [1, 1]} : vector<2x128xf32> to vector<2x32xf32>
    %312 = vector.extract_strided_slice %310 {offsets = [0, 32], sizes = [2, 32], strides = [1, 1]} : vector<2x128xf32> to vector<2x32xf32>
    %313 = vector.extract_strided_slice %310 {offsets = [0, 64], sizes = [2, 32], strides = [1, 1]} : vector<2x128xf32> to vector<2x32xf32>
    %314 = vector.extract_strided_slice %310 {offsets = [0, 96], sizes = [2, 32], strides = [1, 1]} : vector<2x128xf32> to vector<2x32xf32>
    %315 = arith.mulf %312, %298 : vector<2x32xf32>
    %316 = arith.mulf %311, %313 : vector<2x32xf32>
    %317 = arith.addf %315, %316 : vector<2x32xf32>
    %318 = math.tanh %317 : vector<2x32xf32>
    %319 = arith.mulf %314, %318 : vector<2x32xf32>
    %320 = vector.extract_strided_slice %184 {offsets = [14, 0], sizes = [2, 128], strides = [1, 1]} : vector<16x128xf32> to vector<2x128xf32>
    %cst_76 = arith.constant dense<0.000000e+00> : vector<2x128xf32>
    %321 = tpu.matmul %319, %179, %cst_76 {dimension_numbers = #tpu.dot_dimension_numbers<[1], [0], [0], [1], [0, 0, 1, 1], [], []>} : vector<2x32xf32>, vector<32x128xf32>, vector<2x128xf32> -> vector<2x128xf32>
    %322 = arith.addf %320, %321 : vector<2x128xf32>
    %323 = arith.mulf %322, %8 : vector<2x128xf32>
    %324 = math.tanh %323 : vector<2x128xf32>
    %cst_77 = arith.constant 5.000000e-01 : f32
    %325 = vector.broadcast %cst_77 : f32 to vector<2x128xf32>
    %326 = arith.mulf %325, %324 : vector<2x128xf32>
    %cst_78 = arith.constant 5.000000e-01 : f32
    %327 = vector.broadcast %cst_78 : f32 to vector<2x128xf32>
    %328 = arith.addf %326, %327 : vector<2x128xf32>
    %329 = arith.select %5, %324, %328 : vector<2x128xi1>, vector<2x128xf32>
    %330 = vector.extract_strided_slice %329 {offsets = [0, 0], sizes = [2, 32], strides = [1, 1]} : vector<2x128xf32> to vector<2x32xf32>
    %331 = vector.extract_strided_slice %329 {offsets = [0, 32], sizes = [2, 32], strides = [1, 1]} : vector<2x128xf32> to vector<2x32xf32>
    %332 = vector.extract_strided_slice %329 {offsets = [0, 64], sizes = [2, 32], strides = [1, 1]} : vector<2x128xf32> to vector<2x32xf32>
    %333 = vector.extract_strided_slice %329 {offsets = [0, 96], sizes = [2, 32], strides = [1, 1]} : vector<2x128xf32> to vector<2x32xf32>
    %334 = arith.mulf %331, %317 : vector<2x32xf32>
    %335 = arith.mulf %330, %332 : vector<2x32xf32>
    %336 = arith.addf %334, %335 : vector<2x32xf32>
    %337 = math.tanh %336 : vector<2x32xf32>
    %338 = arith.mulf %333, %337 : vector<2x32xf32>
    %c0_79 = arith.constant 0 : index
    %c0_80 = arith.constant 0 : index
    %339 = vector.load %arg7[%c0_79, %c0_80] : memref<1x32xf32, #tpu.memory_space<vmem>>, vector<1x32xf32>
    %340 = vector.broadcast %339 : vector<1x32xf32> to vector<2x32xf32>
    %341 = arith.mulf %338, %340 : vector<2x32xf32>
    %cst_81 = arith.constant dense<0.000000e+00> : vector<2xf32>
    %342 = vector.multi_reduction <add>, %341, %cst_81 [1] : vector<2x32xf32> to vector<2xf32>
    %343 = vector.shape_cast %342 : vector<2xf32> to vector<2x1xf32>
    %c0_82 = arith.constant 0 : index
    %c0_83 = arith.constant 0 : index
    %344 = vector.load %arg8[%c0_82, %c0_83] : memref<1x1xf32, #tpu.memory_space<vmem>>, vector<1x1xf32>
    %345 = vector.broadcast %344 : vector<1x1xf32> to vector<2x1xf32>
    %346 = arith.addf %343, %345 : vector<2x1xf32>
    %c0_84 = arith.constant 0 : index
    %c0_85 = arith.constant 0 : index
    %347 = vector.load %arg9[%c0_84, %c0_85] : memref<2x1xf32, #tpu.memory_space<vmem>>, vector<2x1xf32>
    tpu.vector_store %arg9[%c0_84, %c0_85], %346 {strides = array<i32>} : memref<2x1xf32, #tpu.memory_space<vmem>>, vector<2x1xf32>,
    return
  }
}

</mosaic_0001>

<bundles_post_ra>
// kernel: lstm_model_forward.1
= control target key start
LH: loop header
LB: loop body
LE: loop exit
PB: predicated region body
PF: predicated region fallthrough
CT: control target
= control target key end

     0   :  { %s2907_s0 = inlined_call_operand.vmem [shape: f32[16,6], index: 0, kind: input, shape index: {}]   ;;  %s2908_s1 = inlined_call_operand.hbm [shape: f32[6,128], index: 1, kind: input, shape index: {}]   ;;  %s2909_s2 = inlined_call_operand.vmem [shape: f32[32,128], index: 2, kind: input, shape index: {}]   ;;  %s2910_s3 = inlined_call_operand.vmem [shape: f32[1,128], index: 3, kind: input, shape index: {}]   ;;  %s2911_s4 = inlined_call_operand.hbm [shape: f32[32,128], index: 4, kind: input, shape index: {}]   ;;  %s2912_s5 = inlined_call_operand.hbm [shape: f32[32,128], index: 5, kind: input, shape index: {}]   ;;  %s2913_s6 = inlined_call_operand.vmem [shape: f32[1,128], index: 6, kind: input, shape index: {}]   ;;  %s2914_s7 = inlined_call_operand.vmem [shape: f32[1,32], index: 7, kind: input, shape index: {}]   ;;  %s2915_s8 = inlined_call_operand.<no memory space> [shape: f32[1,1], index: 8, kind: input, shape index: {}]   ;;  %s2916_s9 = inlined_call_operand.vmem [shape: f32[2,1], index: 9, kind: output, shape index: {}]  }
   0x1   :  { %v14_v0 = vstv %s2915_s8 }
   0x2   :  { %15 = vst [vmem:[#allocation3] sm:$0x1] %v14_v0 }
   0x3   :  { %16 = vsyncpa [#allocation5], 0 }
   0x4   :  { %17 = vsyncpa [#allocation7], 0  ;;  %s2436_s11 = smov [#allocation6]  }
   0x5   :  { %s39_s12 = sshll.u32 %s2436_s11, 4  ;;  %s40_s12 = int_to_ptr.vmem [resolvable:$true] %s39_s12 }
   0x6   :  { %s2380_s13 = scalar_lea.vmem %s40_s12, 512  ;;  %p2385_p1 = scmp.lt.s32.totalorder %s40_s12, %s40_s12 }
   0x7   :  { %p2381_p0 = scmp.ne.s32.totalorder %s40_s12, %s2380_s13  ;;  %p2386_p2 = scmp.lt.s32.totalorder %s2380_s13, %s2380_s13 }
   0x9   :  { %p2387_p3 = por %p2386_p2, %p2385_p1 }
   0xb   :  { %p2388_p4 = pnand %p2387_p3, %p2381_p0 }
   0xd   :  { %2391 = shalt.err (!%p2388_p4)
}
   0xe   :  { %s2437_s14 = smov 128   ;;  %s2438_s15 = smov 8  }
   0xf   :  { %45 = dma.hbm_to_vmem [thread:$0]  %s2911_s4, 512, %s40_s12, [#allocation7], %s2437_s14, %s2437_s14, %s2438_s15  }
  0x10   :  { %s2439_s8 = smov [#allocation4]   ;;  %s2440_s19 = smov [#allocation8]  }
  0x11   :  { %s26_s18 = sshll.u32 %s2439_s8, 4  ;;  %s51_s20 = sshll.u32 %s2440_s19, 4  ;;  %s27_s18 = int_to_ptr.vmem [resolvable:$true] %s26_s18  ;;  %s52_s20 = int_to_ptr.vmem [resolvable:$true] %s51_s20 }
  0x12   :  { %s2400_s21 = scalar_lea.vmem %s27_s18, 128  ;;  %p2405_p6 = scmp.lt.s32.totalorder %s27_s18, %s27_s18 }
  0x13   :  { %p2401_p5 = scmp.ne.s32.totalorder %s27_s18, %s2400_s21  ;;  %p2406_p7 = scmp.lt.s32.totalorder %s2400_s21, %s2400_s21 }
  0x15   :  { %p2407_p8 = por %p2406_p7, %p2405_p6 }
  0x17   :  { %p2408_p9 = pnand %p2407_p8, %p2401_p5 }
  0x19   :  { %2411 = shalt.err (!%p2408_p9)
}
  0x1a   :  { %29 = dma.hbm_to_vmem [thread:$0]  %s2908_s1, 128, %s27_s18, [#allocation5]  }
  0x1b   :  { %s2420_s24 = scalar_lea.vmem %s52_s20, 512  ;;  %p2425_p11 = scmp.lt.s32.totalorder %s52_s20, %s52_s20 }
  0x1c   :  { %p2421_p10 = scmp.ne.s32.totalorder %s52_s20, %s2420_s24  ;;  %p2426_p12 = scmp.lt.s32.totalorder %s2420_s24, %s2420_s24 }
  0x1e   :  { %p2427_p13 = por %p2426_p12, %p2425_p11 }
  0x20   :  { %p2428_p0 = pnand %p2427_p13, %p2421_p10 }
  0x22   :  { %2431 = shalt.err (!%p2428_p0)
}
  0x23   :  { %57 = dma.hbm_to_vmem [thread:$0]  %s2912_s5, 512, %s52_s20, [#allocation7], %s2437_s14, %s2437_s14, %s2438_s15  }
  0x24   :  { %2432 = dma.done.wait [#allocation5], 128  }
  0x25   :  { %2433 = vsyncadd [#allocation5], 4294967168 }
  0x26   :  { %2434 = dma.done.wait [#allocation7], 1024  }
  0x27   :  { %2435 = vsyncadd [#allocation7], 4294966272  ;;  %v2441_v1 = vmov 0.0   ;;  %vm2442_vm0 = vmmov 0   ;;  %vm100_vm1 = vcmask 1045504   ;;  %vm93_vm2 = vcmask 48128  }
  0x28   :  { %2110 = vmatprep.subr.mxu1 %v2441_v1  ;;  %2118 = vmatprep.mubr.msk.f32.mxu1 %vm2442_vm0, %v2441_v1  ;;  %v79_v2 = vld [vmem:[#allocation4] sm:$0x3f]  ;;  %v2515_v3 = vld [vmem:[%s2909_s2 + $0x18] sm:$0xff]  ;;  %v85_v4 = vld [vmem:[%s2907_s0] sm:$0xff]  ;;  %v73_v9 = vlaneseq  ;;  %v2443_v17 = vmov 0.5   ;;  %s2445_s15 = smov 32  }
  0x29   :  { %2105 = vmatprep.subr.msk.mxu0 %vm100_vm1, %v79_v2  ;;  %2111 = vmatpush3.msra.mxu1 %v2515_v3  ;;  %v86_v5 = vld [vmem:[%s2907_s0 + $0x8] sm:$0xff]  ;;  %v2527_v6 = vld [vmem:[%s2909_s2 + $0x10] sm:$0xff]  ;;  %v2541_v8 = vld [vmem:[%s2909_s2] sm:$0xff]  ;;  %vm280_vm6 = vcmask 254976   ;;  %vm179_vm7 = vcmask 261120   ;;  %vm387_vm8 = vcmask 257026  }
  0x2a   :  { %2106 = vmatpush3.msk.msra.mxu0 %vm100_vm1, %v79_v2  ;;  %2107 = vmatprep.mubr.msk.f32.mxu0 %vm93_vm2, %v85_v4  ;;  %v2533_v7 = vld [vmem:[%s2909_s2 + $0x8] sm:$0xff]  ;;  %v74_v10 = vand.u32 127, %v73_v9  ;;  %v1993_v11 = vld [vmem:[%s2910_s3] ss:$0 sm:$0xff]  ;;  %s2444_s3 = smov 64   ;;  %vm607_vm9 = vcmask 261126  }
  0x2b   :  { %2112 = vmatprep.subr.mxu1 %v2441_v1  ;;  %2108 = vmatmul.mubr.msk.f32.vlgmr.msra.gmra.mxu0 %vm93_vm2, %v86_v5  ;;  %vm497_vm10 = vcmask 259076   ;;  %s2446_s18 = smov 96   ;;  %vm1985_vm11 = vcmask 7174  }
  0x2c   :  { %2113 = vmatpush3.msra.mxu1 %v2527_v6  ;;  %2121 = vmatprep.subr.mxu0 %v2441_v1  ;;  %vm75_vm3 = vcmp.ge.s32.totalorder %v74_v10, 64  ;;  %vm76_vm4 = vcmp.lt.s32.totalorder %v74_v10, 96 }
  0x2d   :  { %2114 = vmatprep.subr.mxu1 %v2441_v1  ;;  %2122 = vmatpush3.msra.mxu0 %v2515_v3  ;;  %vm2575_vm5 = vmand %vm75_vm3, %vm76_vm4 }
  0x2e   :  { %2115 = vmatpush3.msra.mxu1 %v2533_v7  ;;  %2123 = vmatprep.subr.mxu0 %v2441_v1  ;;  %v2581_v18 = vsel %vm2575_vm5, 1.0, %v2443_v17 }
  0x2f   :  { %2116 = vmatprep.subr.mxu1 %v2441_v1  ;;  %2124 = vmatpush3.msra.mxu0 %v2527_v6 }
  0x30   :  { %2117 = vmatpush3.msra.mxu1 %v2541_v8  ;;  %2125 = vmatprep.subr.mxu0 %v2441_v1 }
  0x31   :  { %2119 = vmatmul.mubr.f32.vlgmr.msra.gmra.mxu1 %v2441_v1  ;;  %2126 = vmatpush3.msra.mxu0 %v2533_v7 }
  0x32   :  { %2127 = vmatprep.subr.mxu0 %v2441_v1  ;;  %2129 = vmatprep.mubr.msk.f32.mxu0 %vm2442_vm0, %v2441_v1 }
  0x33   :  { %2128 = vmatpush3.msra.mxu0 %v2541_v8  ;;  %2132 = vmatprep.subr.mxu1 %v2441_v1 }
  0x34   :  { %2133 = vmatpush3.msra.mxu1 %v2515_v3  ;;  %2140 = vmatprep.mubr.msk.f32.mxu1 %vm2442_vm0, %v2441_v1 }
  0x35   :  { %2134 = vmatprep.subr.mxu1 %v2441_v1  ;;  %2143 = vmatprep.subr.mxu0 %v2441_v1 }
  0x36   :  { %2135 = vmatpush3.msra.mxu1 %v2527_v6 }
  0x37   :  { %2136 = vmatprep.subr.mxu1 %v2441_v1 }
  0x38   :  { %2137 = vmatpush3.msra.mxu1 %v2533_v7 }
  0x39   :  { %2138 = vmatprep.subr.mxu1 %v2441_v1 }
  0x3a   :  { %2139 = vmatpush3.msra.mxu1 %v2541_v8 }
  0x3b   :  { %2154 = vmatprep.subr.mxu1 %v2441_v1 }
  0xeb   :  { %v2109_v12 = vpop.f32.mrf.mxu0 }
  0xec   :  { %v2571_v13 = vadd.f32 %v2109_v12, %v1993_v11 }
  0xed   :  { %v170_v14 = vpop.f32.mrf.mxu0 }
  0xee   :  { %v2573_v15 = vadd.f32 %v1993_v11, %v170_v14 }
  0xf1   :  { %v249_v19 = vpop.f32.mrf.mxu1 }
  0xf2   :  { %v253_v20 = vadd.f32 %v249_v19, %v2573_v15 }
  0xf3   :  { %v2120_v21 = vpop.f32.mrf.mxu1 }
  0xf4   :  { %v254_v22 = vmul.f32 %v253_v20, %v2581_v18 }
  0xf6   :  { %2308 = vtanh.f32 %v254_v22 }
 0x103   :  { %v2309_v23 = vpop.eup %2308 }
 0x104   :  { %v256_v24 = vmul.f32 0.5, %v2309_v23 }
 0x106   :  { %v257_v25 = vadd.f32 0.5, %v256_v24 }
 0x108   :  { %v258_v26 = vsel %vm2575_vm5, %v2309_v23, %v257_v25 }
 0x109   :  { %261 = vrot.lane.b32.xlu0 %v258_v26, %s2444_s3  ;;  %v259_v29 = vmul.f32 0.0, %v258_v26 }
 0x17b   :  { %v262_v27 = vpop.permute.xlu0 %261 }
 0x17c   :  { %v264_v28 = vmul.f32 %v262_v27, %v258_v26 }
 0x17e   :  { %266 = vrot.lane.b32.xlu0 %v264_v28, %s2445_s15 }
 0x1f0   :  { %v267_v30 = vpop.permute.xlu0 %266 }
 0x1f1   :  { %v269_v31 = vadd.f32 %v267_v30, %v259_v29 }
 0x1f3   :  { %2310 = vtanh.f32 %v269_v31  ;;  %v364_v47 = vrot.slane %v269_v31, 6 }
 0x200   :  { %v2311_v32 = vpop.eup %2310 }
 0x201   :  { %272 = vrot.lane.b32.xlu1 %v2311_v32, %s2444_s3 }
 0x273   :  { %v273_v33 = vpop.permute.xlu1 %272 }
 0x274   :  { %v275_v34 = vmul.f32 %v273_v33, %v258_v26 }
 0x276   :  { %277 = vrot.lane.b32.xlu1 %v275_v34, %s2445_s15 }
 0x2e8   :  { %v278_v35 = vpop.permute.xlu1 %277 }
 0x2e9   :  { %281 = vst.msk [vmem:[#allocation2] sm:$0x3] %vm280_vm6, %v278_v35  ;;  %2130 = vmatmul.mubr.msk.f32.vlgmr.msra.gmra.mxu0 %vm179_vm7, %v278_v35 }
 0x2ea   :  { %2144 = vmatpush3.msra.mxu0 %v2515_v3  ;;  %2151 = vmatprep.mubr.msk.f32.mxu0 %vm2442_vm0, %v2441_v1 }
 0x2eb   :  { %2145 = vmatprep.subr.mxu0 %v2441_v1 }
 0x2ec   :  { %2146 = vmatpush3.msra.mxu0 %v2527_v6 }
 0x2ed   :  { %2147 = vmatprep.subr.mxu0 %v2441_v1 }
 0x2ee   :  { %2148 = vmatpush3.msra.mxu0 %v2533_v7 }
 0x2ef   :  { %2149 = vmatprep.subr.mxu0 %v2441_v1 }
 0x2f0   :  { %2150 = vmatpush3.msra.mxu0 %v2541_v8 }
 0x2f1   :  { %2165 = vmatprep.subr.mxu0 %v2441_v1 }
 0x3a9   :  { %v350_v36 = vpop.f32.mrf.mxu0 }
 0x3aa   :  { %v355_v37 = vrot.slane %v350_v36, 6 }
 0x3ab   :  { %v2131_v38 = vpop.f32.mrf.mxu0 }
 0x3ac   :  { %v357_v39 = vadd.f32 %v355_v37, %v2573_v15 }
 0x3ae   :  { %v358_v40 = vmul.f32 %v357_v39, %v2581_v18 }
 0x3b0   :  { %2312 = vtanh.f32 %v358_v40 }
 0x3bd   :  { %v2313_v41 = vpop.eup %2312 }
 0x3be   :  { %v360_v42 = vmul.f32 0.5, %v2313_v41 }
 0x3c0   :  { %v361_v43 = vadd.f32 0.5, %v360_v42 }
 0x3c2   :  { %v362_v44 = vsel %vm2575_vm5, %v2313_v41, %v361_v43 }
 0x3c3   :  { %368 = vrot.lane.b32.xlu0 %v362_v44, %s2444_s3  ;;  %v366_v48 = vmul.f32 %v364_v47, %v362_v44 }
 0x435   :  { %v369_v45 = vpop.permute.xlu0 %368 }
 0x436   :  { %v371_v46 = vmul.f32 %v369_v45, %v362_v44 }
 0x438   :  { %373 = vrot.lane.b32.xlu1 %v371_v46, %s2445_s15 }
 0x4aa   :  { %v374_v49 = vpop.permute.xlu1 %373 }
 0x4ab   :  { %v376_v50 = vadd.f32 %v374_v49, %v366_v48 }
 0x4ad   :  { %2314 = vtanh.f32 %v376_v50  ;;  %v474_v5 = vrot.slane %v376_v50, 6 }
 0x4ba   :  { %v2315_v51 = vpop.eup %2314 }
 0x4bb   :  { %379 = vrot.lane.b32.xlu0 %v2315_v51, %s2444_s3 }
 0x52d   :  { %v380_v52 = vpop.permute.xlu0 %379 }
 0x52e   :  { %v2610_v53 = vmul.f32 %v380_v52, %v362_v44 }
 0x530   :  { %v389_v54 = vrot.slane %v2610_v53, 2 }
 0x532   :  { %390 = vrot.lane.b32.xlu1 %v389_v54, %s2445_s15 }
 0x5a4   :  { %v391_v55 = vpop.permute.xlu1 %390 }
 0x5a5   :  { %2141 = vmatmul.mubr.msk.f32.vlgmr.msra.gmra.mxu1 %vm179_vm7, %v391_v55 }
 0x5a6   :  { %2155 = vmatpush3.msra.mxu1 %v2515_v3  ;;  %2162 = vmatprep.mubr.msk.f32.mxu1 %vm2442_vm0, %v2441_v1 }
 0x5a7   :  { %2156 = vmatprep.subr.mxu1 %v2441_v1 }
 0x5a8   :  { %2157 = vmatpush3.msra.mxu1 %v2527_v6 }
 0x5a9   :  { %2158 = vmatprep.subr.mxu1 %v2441_v1 }
 0x5aa   :  { %2159 = vmatpush3.msra.mxu1 %v2533_v7 }
 0x5ab   :  { %2160 = vmatprep.subr.mxu1 %v2441_v1 }
 0x5ac   :  { %2161 = vmatpush3.msra.mxu1 %v2541_v8 }
 0x5ad   :  { %2176 = vmatprep.subr.mxu1 %v2441_v1 }
 0x665   :  { %v460_v56 = vpop.f32.mrf.mxu1 }
 0x666   :  { %v465_v57 = vrot.slane %v460_v56, 4 }
 0x667   :  { %v2142_v58 = vpop.f32.mrf.mxu1 }
 0x668   :  { %v467_v59 = vadd.f32 %v465_v57, %v2573_v15 }
 0x66a   :  { %v468_v60 = vmul.f32 %v467_v59, %v2581_v18 }
 0x66c   :  { %2316 = vtanh.f32 %v468_v60 }
 0x679   :  { %v2317_v61 = vpop.eup %2316 }
 0x67a   :  { %v470_v62 = vmul.f32 0.5, %v2317_v61 }
 0x67c   :  { %v471_v63 = vadd.f32 0.5, %v470_v62 }
 0x67e   :  { %v472_v0 = vsel %vm2575_vm5, %v2317_v61, %v471_v63 }
 0x67f   :  { %478 = vrot.lane.b32.xlu0 %v472_v0, %s2444_s3  ;;  %v476_v9 = vmul.f32 %v474_v5, %v472_v0 }
 0x6f1   :  { %v479_v2 = vpop.permute.xlu0 %478 }
 0x6f2   :  { %v481_v4 = vmul.f32 %v479_v2, %v472_v0 }
 0x6f4   :  { %483 = vrot.lane.b32.xlu1 %v481_v4, %s2445_s15 }
 0x766   :  { %v484_v10 = vpop.permute.xlu1 %483 }
 0x767   :  { %v486_v11 = vadd.f32 %v484_v10, %v476_v9 }
 0x769   :  { %2318 = vtanh.f32 %v486_v11  ;;  %v584_v32 = vrot.slane %v486_v11, 6 }
 0x776   :  { %v2319_v12 = vpop.eup %2318 }
 0x777   :  { %489 = vrot.lane.b32.xlu0 %v2319_v12, %s2444_s3 }
 0x7e9   :  { %v490_v14 = vpop.permute.xlu0 %489 }
 0x7ea   :  { %v2632_v17 = vmul.f32 %v490_v14, %v472_v0 }
 0x7ec   :  { %v499_v19 = vrot.slane %v2632_v17, 4 }
 0x7ee   :  { %500 = vrot.lane.b32.xlu1 %v499_v19, %s2445_s15 }
 0x860   :  { %v501_v20 = vpop.permute.xlu1 %500 }
 0x861   :  { %2152 = vmatmul.mubr.msk.f32.vlgmr.msra.gmra.mxu0 %vm179_vm7, %v501_v20 }
 0x862   :  { %2166 = vmatpush3.msra.mxu0 %v2515_v3  ;;  %2173 = vmatprep.mubr.msk.f32.mxu0 %vm2442_vm0, %v2441_v1 }
 0x863   :  { %2167 = vmatprep.subr.mxu0 %v2441_v1 }
 0x864   :  { %2168 = vmatpush3.msra.mxu0 %v2527_v6 }
 0x865   :  { %2169 = vmatprep.subr.mxu0 %v2441_v1 }
 0x866   :  { %2170 = vmatpush3.msra.mxu0 %v2533_v7 }
 0x867   :  { %2171 = vmatprep.subr.mxu0 %v2441_v1 }
 0x868   :  { %2172 = vmatpush3.msra.mxu0 %v2541_v8 }
 0x869   :  { %2187 = vmatprep.subr.mxu0 %v2441_v1 }
 0x921   :  { %v570_v21 = vpop.f32.mrf.mxu0 }
 0x922   :  { %v575_v22 = vrot.slane %v570_v21, 2 }
 0x923   :  { %v2153_v23 = vpop.f32.mrf.mxu0 }
 0x924   :  { %v577_v24 = vadd.f32 %v575_v22, %v2573_v15 }
 0x926   :  { %v578_v25 = vmul.f32 %v577_v24, %v2581_v18 }
 0x928   :  { %2320 = vtanh.f32 %v578_v25 }
 0x935   :  { %v2321_v26 = vpop.eup %2320 }
 0x936   :  { %v580_v27 = vmul.f32 0.5, %v2321_v26 }
 0x938   :  { %v581_v28 = vadd.f32 0.5, %v580_v27 }
 0x93a   :  { %v582_v29 = vsel %vm2575_vm5, %v2321_v26, %v581_v28 }
 0x93b   :  { %588 = vrot.lane.b32.xlu0 %v582_v29, %s2444_s3  ;;  %v586_v33 = vmul.f32 %v584_v32, %v582_v29 }
 0x9ad   :  { %v589_v30 = vpop.permute.xlu0 %588 }
 0x9ae   :  { %v591_v31 = vmul.f32 %v589_v30, %v582_v29 }
 0x9b0   :  { %593 = vrot.lane.b32.xlu1 %v591_v31, %s2445_s15 }
 0xa22   :  { %v594_v34 = vpop.permute.xlu1 %593 }
 0xa23   :  { %v596_v35 = vadd.f32 %v594_v34, %v586_v33 }
 0xa25   :  { %2322 = vtanh.f32 %v596_v35  ;;  %v691_v50 = vrot.slane %v596_v35, 6 }
 0xa32   :  { %v2323_v15 = vpop.eup %2322 }
 0xa33   :  { %599 = vrot.lane.b32.xlu0 %v2323_v15, %s2444_s3 }
 0xaa5   :  { %v600_v36 = vpop.permute.xlu0 %599 }
 0xaa6   :  { %v2654_v37 = vmul.f32 %v600_v36, %v582_v29 }
 0xaa8   :  { %v609_v38 = vrot.slane %v2654_v37, 6 }
 0xaaa   :  { %610 = vrot.lane.b32.xlu1 %v609_v38, %s2445_s15 }
 0xb1c   :  { %v611_v39 = vpop.permute.xlu1 %610 }
 0xb1d   :  { %2163 = vmatmul.mubr.msk.f32.vlgmr.msra.gmra.mxu1 %vm179_vm7, %v611_v39 }
 0xb1e   :  { %2177 = vmatpush3.msra.mxu1 %v2515_v3  ;;  %2184 = vmatprep.mubr.msk.f32.mxu1 %vm2442_vm0, %v2441_v1 }
 0xb1f   :  { %2178 = vmatprep.subr.mxu1 %v2441_v1 }
 0xb20   :  { %2179 = vmatpush3.msra.mxu1 %v2527_v6 }
 0xb21   :  { %2180 = vmatprep.subr.mxu1 %v2441_v1 }
 0xb22   :  { %2181 = vmatpush3.msra.mxu1 %v2533_v7 }
 0xb23   :  { %2182 = vmatprep.subr.mxu1 %v2441_v1 }
 0xb24   :  { %2183 = vmatpush3.msra.mxu1 %v2541_v8 }
 0xbdd   :  { %v680_v40 = vpop.f32.mrf.mxu1 }
 0xbde   :  { %v684_v41 = vadd.f32 %v680_v40, %v2571_v13 }
 0xbdf   :  { %v2164_v42 = vpop.f32.mrf.mxu1 }
 0xbe0   :  { %v685_v43 = vmul.f32 %v684_v41, %v2581_v18 }
 0xbe2   :  { %2324 = vtanh.f32 %v685_v43 }
 0xbef   :  { %v2325_v44 = vpop.eup %2324 }
 0xbf0   :  { %v687_v45 = vmul.f32 0.5, %v2325_v44 }
 0xbf2   :  { %v688_v46 = vadd.f32 0.5, %v687_v45 }
 0xbf4   :  { %v689_v47 = vsel %vm2575_vm5, %v2325_v44, %v688_v46 }
 0xbf5   :  { %695 = vrot.lane.b32.xlu0 %v689_v47, %s2444_s3  ;;  %v693_v51 = vmul.f32 %v691_v50, %v689_v47 }
 0xc67   :  { %v696_v48 = vpop.permute.xlu0 %695 }
 0xc68   :  { %v698_v49 = vmul.f32 %v696_v48, %v689_v47 }
 0xc6a   :  { %700 = vrot.lane.b32.xlu1 %v698_v49, %s2445_s15 }
 0xcdc   :  { %v701_v52 = vpop.permute.xlu1 %700 }
 0xcdd   :  { %v703_v54 = vadd.f32 %v701_v52, %v693_v51 }
 0xcdf   :  { %2326 = vtanh.f32 %v703_v54  ;;  %v797_v4 = vrot.slane %v703_v54, 6 }
 0xcec   :  { %v2327_v55 = vpop.eup %2326 }
 0xced   :  { %706 = vrot.lane.b32.xlu0 %v2327_v55, %s2444_s3 }
 0xd5f   :  { %v707_v56 = vpop.permute.xlu0 %706 }
 0xd60   :  { %v709_v57 = vmul.f32 %v707_v56, %v689_v47 }
 0xd62   :  { %711 = vrot.lane.b32.xlu1 %v709_v57, %s2445_s15 }
 0xdd4   :  { %v712_v58 = vpop.permute.xlu1 %711 }
 0xdd5   :  { %714 = vst.msk [vmem:[#allocation2 + $0x8] sm:$0x3] %vm280_vm6, %v712_v58  ;;  %2174 = vmatmul.mubr.msk.f32.vlgmr.msra.gmra.mxu0 %vm179_vm7, %v712_v58  ;;  %v1042_v58 = vld [vmem:[#allocation6 + $0x18] sm:$0xff] }
 0xdd6   :  { %2188 = vmatpush3.msra.mxu0 %v2515_v3  ;;  %2195 = vmatprep.mubr.msk.f32.mxu0 %vm2442_vm0, %v2441_v1 }
 0xdd7   :  { %2189 = vmatprep.subr.mxu0 %v2441_v1  ;;  %2198 = vmatprep.subr.mxu1 %v1042_v58 }
 0xdd8   :  { %2190 = vmatpush3.msra.mxu0 %v2527_v6 }
 0xdd9   :  { %2191 = vmatprep.subr.mxu0 %v2441_v1 }
 0xdda   :  { %2192 = vmatpush3.msra.mxu0 %v2533_v7 }
 0xddb   :  { %2193 = vmatprep.subr.mxu0 %v2441_v1 }
 0xddc   :  { %2194 = vmatpush3.msra.mxu0 %v2541_v8 }
 0xddd   :  { %2209 = vmatprep.subr.mxu0 %v2441_v1 }
 0xe95   :  { %v783_v59 = vpop.f32.mrf.mxu0 }
 0xe96   :  { %v788_v60 = vrot.slane %v783_v59, 6  ;;  %v1041_v59 = vld [vmem:[#allocation6 + $0x10] sm:$0xff] }
 0xe97   :  { %v2175_v3 = vpop.f32.mrf.mxu0 }
 0xe98   :  { %v790_v61 = vadd.f32 %v788_v60, %v2571_v13  ;;  %v2730_v60 = vld [vmem:[#allocation8 + $0x18] sm:$0xff]  ;;  %v1040_v3 = vld [vmem:[#allocation6 + $0x8] sm:$0xff] }
 0xe9a   :  { %v791_v62 = vmul.f32 %v790_v61, %v2581_v18  ;;  %v2733_v61 = vld [vmem:[#allocation8 + $0x10] sm:$0xff] }
 0xe9c   :  { %2328 = vtanh.f32 %v791_v62  ;;  %v2736_v62 = vld [vmem:[#allocation8 + $0x8] sm:$0xff] }
 0xea9   :  { %v2329_v63 = vpop.eup %2328 }
 0xeaa   :  { %v793_v6 = vmul.f32 0.5, %v2329_v63 }
 0xeac   :  { %v794_v0 = vadd.f32 0.5, %v793_v6 }
 0xeae   :  { %v795_v7 = vsel %vm2575_vm5, %v2329_v63, %v794_v0  ;;  %v2742_v63 = vld [vmem:[#allocation8] sm:$0xff] }
 0xeaf   :  { %801 = vrot.lane.b32.xlu0 %v795_v7, %s2444_s3  ;;  %v799_v5 = vmul.f32 %v797_v4, %v795_v7 }
 0xf21   :  { %v802_v2 = vpop.permute.xlu0 %801 }
 0xf22   :  { %v804_v8 = vmul.f32 %v802_v2, %v795_v7 }
 0xf24   :  { %806 = vrot.lane.b32.xlu1 %v804_v8, %s2445_s15 }
 0xf96   :  { %v807_v9 = vpop.permute.xlu1 %806 }
 0xf97   :  { %v809_v10 = vadd.f32 %v807_v9, %v799_v5 }
 0xf99   :  { %2330 = vtanh.f32 %v809_v10  ;;  %v906_v32 = vrot.slane %v809_v10, 6 }
 0xfa6   :  { %v2331_v11 = vpop.eup %2330 }
 0xfa7   :  { %812 = vrot.lane.b32.xlu0 %v2331_v11, %s2444_s3  ;;  %v2004_v11 = vld [vmem:[%s2913_s6] ss:$0 sm:$0xff] }
0x1019   :  { %v813_v12 = vpop.permute.xlu0 %812 }
0x101a   :  { %v2695_v14 = vmul.f32 %v813_v12, %v795_v7 }
0x101c   :  { %v821_v19 = vrot.slane %v2695_v14, 2 }
0x101e   :  { %822 = vrot.lane.b32.xlu1 %v821_v19, %s2445_s15 }
0x1090   :  { %v823_v20 = vpop.permute.xlu1 %822 }
0x1091   :  { %2185 = vmatmul.mubr.msk.f32.vlgmr.msra.gmra.mxu1 %vm179_vm7, %v823_v20 }
0x1092   :  { %2199 = vmatpush3.msra.mxu1 %v1042_v58 }
0x1093   :  { %2200 = vmatprep.subr.mxu1 %v1041_v59 }
0x1094   :  { %2201 = vmatpush3.msra.mxu1 %v1041_v59 }
0x1095   :  { %2202 = vmatprep.subr.mxu1 %v1040_v3 }
0x1096   :  { %2203 = vmatpush3.msra.mxu1 %v1040_v3 }
0x1151   :  { %v892_v21 = vpop.f32.mrf.mxu1 }
0x1152   :  { %v897_v22 = vrot.slane %v892_v21, 4 }
0x1153   :  { %v2186_v23 = vpop.f32.mrf.mxu1 }
0x1154   :  { %v899_v24 = vadd.f32 %v897_v22, %v2571_v13 }
0x1156   :  { %v900_v25 = vmul.f32 %v899_v24, %v2581_v18 }
0x1158   :  { %2332 = vtanh.f32 %v900_v25 }
0x1165   :  { %v2333_v26 = vpop.eup %2332 }
0x1166   :  { %v902_v27 = vmul.f32 0.5, %v2333_v26 }
0x1168   :  { %v903_v28 = vadd.f32 0.5, %v902_v27 }
0x116a   :  { %v904_v29 = vsel %vm2575_vm5, %v2333_v26, %v903_v28 }
0x116b   :  { %910 = vrot.lane.b32.xlu0 %v904_v29, %s2444_s3  ;;  %v908_v33 = vmul.f32 %v906_v32, %v904_v29 }
0x11dd   :  { %v911_v30 = vpop.permute.xlu0 %910 }
0x11de   :  { %v913_v31 = vmul.f32 %v911_v30, %v904_v29 }
0x11e0   :  { %915 = vrot.lane.b32.xlu1 %v913_v31, %s2445_s15 }
0x1252   :  { %v916_v34 = vpop.permute.xlu1 %915 }
0x1253   :  { %v918_v35 = vadd.f32 %v916_v34, %v908_v33 }
0x1255   :  { %2334 = vtanh.f32 %v918_v35 }
0x1262   :  { %v2335_v15 = vpop.eup %2334 }
0x1263   :  { %921 = vrot.lane.b32.xlu0 %v2335_v15, %s2444_s3 }
0x12d5   :  { %v922_v36 = vpop.permute.xlu0 %921 }
0x12d6   :  { %v924_v38 = vmul.f32 %v922_v36, %v904_v29 }
0x12d8   :  { %v930_v39 = vrot.slane %v924_v38, 4 }
0x12da   :  { %931 = vrot.lane.b32.xlu1 %v930_v39, %s2445_s15 }
0x134c   :  { %v932_v40 = vpop.permute.xlu1 %931 }
0x134d   :  { %2196 = vmatmul.mubr.msk.f32.vlgmr.msra.gmra.mxu0 %vm179_vm7, %v932_v40 }
0x134e   :  { %2217 = vmatprep.mubr.msk.f32.mxu0 %vm2442_vm0, %v2441_v1  ;;  %2210 = vmatpush3.msra.mxu0 %v2730_v60 }
0x134f   :  { %2211 = vmatprep.subr.mxu0 %v2441_v1 }
0x1350   :  { %2212 = vmatpush3.msra.mxu0 %v2733_v61 }
0x1351   :  { %2213 = vmatprep.subr.mxu0 %v2441_v1 }
0x1352   :  { %2214 = vmatpush3.msra.mxu0 %v2736_v62 }
0x1353   :  { %2215 = vmatprep.subr.mxu0 %v2441_v1 }
0x1354   :  { %2216 = vmatpush3.msra.mxu0 %v2742_v63 }
0x1355   :  { %2218 = vmatmul.mubr.f32.vlgmr.msra.gmra.mxu0 %v2441_v1  ;;  %2231 = vmatprep.subr.mxu0 %v2441_v1 }
0x1356   :  { %2232 = vmatpush3.msra.mxu0 %v2730_v60  ;;  %2239 = vmatprep.mubr.msk.f32.mxu0 %vm2442_vm0, %v2441_v1 }
0x1357   :  { %2233 = vmatprep.subr.mxu0 %v2441_v1 }
0x1358   :  { %2234 = vmatpush3.msra.mxu0 %v2733_v61 }
0x1359   :  { %2235 = vmatprep.subr.mxu0 %v2441_v1 }
0x135a   :  { %2236 = vmatpush3.msra.mxu0 %v2736_v62 }
0x135b   :  { %2237 = vmatprep.subr.mxu0 %v2441_v1 }
0x135c   :  { %2238 = vmatpush3.msra.mxu0 %v2742_v63 }
0x135d   :  { %2253 = vmatprep.subr.mxu0 %v2441_v1 }
0x140d   :  { %v1001_v41 = vpop.f32.mrf.mxu0 }
0x140e   :  { %v1006_v42 = vrot.slane %v1001_v41, 2 }
0x140f   :  { %v2197_v43 = vpop.f32.mrf.mxu0 }
0x1410   :  { %v1008_v44 = vadd.f32 %v1006_v42, %v2571_v13  ;;  %v1015_v13 = vrot.slane %v918_v35, 6 }
0x1412   :  { %v1009_v45 = vmul.f32 %v1008_v44, %v2581_v18 }
0x1414   :  { %2336 = vtanh.f32 %v1009_v45 }
0x1415   :  { %v1203_v9 = vpop.f32.mrf.mxu0 }
0x1417   :  { %v2219_v10 = vpop.f32.mrf.mxu0 }
0x1421   :  { %v2337_v46 = vpop.eup %2336 }
0x1422   :  { %v1011_v47 = vmul.f32 0.5, %v2337_v46 }
0x1424   :  { %v1012_v48 = vadd.f32 0.5, %v1011_v47 }
0x1426   :  { %v1013_v49 = vsel %vm2575_vm5, %v2337_v46, %v1012_v48 }
0x1427   :  { %1019 = vrot.lane.b32.xlu0 %v1013_v49, %s2444_s3  ;;  %v1017_v52 = vmul.f32 %v1015_v13, %v1013_v49 }
0x1499   :  { %v1020_v50 = vpop.permute.xlu0 %1019 }
0x149a   :  { %v1022_v51 = vmul.f32 %v1020_v50, %v1013_v49 }
0x149c   :  { %1024 = vrot.lane.b32.xlu1 %v1022_v51, %s2445_s15 }
0x14a0   :  { %384 = vrot.lane.b32.xlu1 %v2610_v53, %s2445_s15 }
0x14a4   :  { %604 = vrot.lane.b32.xlu1 %v2654_v37, %s2445_s15 }
0x14a8   :  { %926 = vrot.lane.b32.xlu1 %v924_v38, %s2445_s15 }
0x150e   :  { %v1025_v54 = vpop.permute.xlu1 %1024 }
0x150f   :  { %v1027_v55 = vadd.f32 %v1025_v54, %v1017_v52 }
0x1511   :  { %2338 = vtanh.f32 %v1027_v55 }
0x1512   :  { %v385_v56 = vpop.permute.xlu1 %384 }
0x1513   :  { %388 = vst.msk [vmem:[#allocation2] sm:$0xc] %vm387_vm8, %v385_v56 }
0x1516   :  { %v605_v57 = vpop.permute.xlu1 %604 }
0x1517   :  { %608 = vst.msk [vmem:[#allocation2] sm:$0xc0] %vm607_vm9, %v605_v57 }
0x151a   :  { %v927_v53 = vpop.permute.xlu1 %926 }
0x151b   :  { %929 = vst.msk [vmem:[#allocation2 + $0x8] sm:$0x30] %vm497_vm10, %v927_v53 }
0x151e   :  { %v2339_v37 = vpop.eup %2338 }
0x151f   :  { %1030 = vrot.lane.b32.xlu0 %v2339_v37, %s2444_s3 }
0x1523   :  { %494 = vrot.lane.b32.xlu0 %v2632_v17, %s2445_s15  ;;  %v1039_v17 = vld [vmem:[#allocation6] sm:$0xff] }
0x1524   :  { %2204 = vmatprep.subr.mxu1 %v1039_v17 }
0x1525   :  { %2205 = vmatpush3.msra.mxu1 %v1039_v17 }
0x1526   :  { %2220 = vmatprep.subr.mxu1 %v2441_v1 }
0x1527   :  { %817 = vrot.lane.b32.xlu0 %v2695_v14, %s2445_s15 }
0x1591   :  { %v1031_v6 = vpop.permute.xlu0 %1030 }
0x1592   :  { %v1033_v0 = vmul.f32 %v1031_v6, %v1013_v49 }
0x1594   :  { %1035 = vrot.lane.b32.xlu0 %v1033_v0, %s2445_s15 }
0x1595   :  { %v495_v7 = vpop.permute.xlu0 %494 }
0x1596   :  { %498 = vst.msk [vmem:[#allocation2] sm:$0x30] %vm497_vm10, %v495_v7 }
0x1599   :  { %v818_v2 = vpop.permute.xlu0 %817 }
0x159a   :  { %820 = vst.msk [vmem:[#allocation2 + $0x8] sm:$0xc] %vm387_vm8, %v818_v2 }
0x159d   :  { %v1048_v8 = vld [vmem:[#allocation2] sm:$0xff] }
0x159e   :  { %2206 = vmatprep.mubr.msk.f32.mxu1 %vm179_vm7, %v1048_v8 }
0x1606   :  { %v1036_v4 = vpop.permute.xlu0 %1035 }
0x1607   :  { %1038 = vst.msk [vmem:[#allocation2 + $0x8] sm:$0xc0] %vm607_vm9, %v1036_v4 }
0x160e   :  { %v1049_v5 = vld [vmem:[#allocation2 + $0x8] sm:$0xff] }
0x160f   :  { %2207 = vmatmul.mubr.msk.f32.vlgmr.msra.gmra.mxu1 %vm179_vm7, %v1049_v5 }
0x1610   :  { %2221 = vmatpush3.msra.mxu1 %v2730_v60  ;;  %2228 = vmatprep.mubr.msk.f32.mxu1 %vm2442_vm0, %v2441_v1 }
0x1611   :  { %2222 = vmatprep.subr.mxu1 %v2441_v1 }
0x1612   :  { %2223 = vmatpush3.msra.mxu1 %v2733_v61 }
0x1613   :  { %2224 = vmatprep.subr.mxu1 %v2441_v1 }
0x1614   :  { %2225 = vmatpush3.msra.mxu1 %v2736_v62 }
0x1615   :  { %2226 = vmatprep.subr.mxu1 %v2441_v1 }
0x1616   :  { %2227 = vmatpush3.msra.mxu1 %v2742_v63 }
0x1617   :  { %2242 = vmatprep.subr.mxu1 %v2441_v1 }
0x16cf   :  { %v2208_v12 = vpop.f32.mrf.mxu1 }
0x16d0   :  { %v2777_v14 = vadd.f32 %v2208_v12, %v2004_v11 }
0x16d1   :  { %v1128_v19 = vpop.f32.mrf.mxu1 }
0x16d2   :  { %v2779_v20 = vadd.f32 %v2004_v11, %v1128_v19 }
0x16d4   :  { %v1207_v21 = vadd.f32 %v1203_v9, %v2779_v20 }
0x16d6   :  { %v1208_v22 = vmul.f32 %v1207_v21, %v2581_v18 }
0x16d8   :  { %2340 = vtanh.f32 %v1208_v22 }
0x16e5   :  { %v2341_v23 = vpop.eup %2340 }
0x16e6   :  { %v1210_v24 = vmul.f32 0.5, %v2341_v23 }
0x16e8   :  { %v1211_v25 = vadd.f32 0.5, %v1210_v24 }
0x16ea   :  { %v1212_v26 = vsel %vm2575_vm5, %v2341_v23, %v1211_v25 }
0x16eb   :  { %1215 = vrot.lane.b32.xlu1 %v1212_v26, %s2444_s3  ;;  %v1213_v29 = vmul.f32 0.0, %v1212_v26 }
0x175d   :  { %v1216_v27 = vpop.permute.xlu1 %1215 }
0x175e   :  { %v1218_v28 = vmul.f32 %v1216_v27, %v1212_v26 }
0x1760   :  { %1220 = vrot.lane.b32.xlu0 %v1218_v28, %s2445_s15 }
0x17d2   :  { %v1221_v30 = vpop.permute.xlu0 %1220 }
0x17d3   :  { %v1223_v31 = vadd.f32 %v1221_v30, %v1213_v29 }
0x17d5   :  { %2342 = vtanh.f32 %v1223_v31  ;;  %v1315_v47 = vrot.slane %v1223_v31, 6 }
0x17e2   :  { %v2343_v32 = vpop.eup %2342 }
0x17e3   :  { %1226 = vrot.lane.b32.xlu1 %v2343_v32, %s2444_s3 }
0x1855   :  { %v1227_v33 = vpop.permute.xlu1 %1226 }
0x1856   :  { %v1229_v34 = vmul.f32 %v1227_v33, %v1212_v26 }
0x1858   :  { %1231 = vrot.lane.b32.xlu0 %v1229_v34, %s2445_s15 }
0x18ca   :  { %v1232_v35 = vpop.permute.xlu0 %1231 }
0x18cb   :  { %2229 = vmatmul.mubr.msk.f32.vlgmr.msra.gmra.mxu1 %vm179_vm7, %v1232_v35 }
0x18cc   :  { %2243 = vmatpush3.msra.mxu1 %v2730_v60  ;;  %2250 = vmatprep.mubr.msk.f32.mxu1 %vm2442_vm0, %v2441_v1 }
0x18cd   :  { %2244 = vmatprep.subr.mxu1 %v2441_v1 }
0x18ce   :  { %2245 = vmatpush3.msra.mxu1 %v2733_v61 }
0x18cf   :  { %2246 = vmatprep.subr.mxu1 %v2441_v1 }
0x18d0   :  { %2247 = vmatpush3.msra.mxu1 %v2736_v62 }
0x18d1   :  { %2248 = vmatprep.subr.mxu1 %v2441_v1 }
0x18d2   :  { %2249 = vmatpush3.msra.mxu1 %v2742_v63 }
0x18d3   :  { %2264 = vmatprep.subr.mxu1 %v2441_v1 }
0x198b   :  { %v1301_v15 = vpop.f32.mrf.mxu1 }
0x198c   :  { %v1306_v36 = vrot.slane %v1301_v15, 6 }
0x198d   :  { %v2230_v38 = vpop.f32.mrf.mxu1 }
0x198e   :  { %v1308_v39 = vadd.f32 %v1306_v36, %v2779_v20 }
0x1990   :  { %v1309_v40 = vmul.f32 %v1308_v39, %v2581_v18 }
0x1992   :  { %2344 = vtanh.f32 %v1309_v40 }
0x199f   :  { %v2345_v41 = vpop.eup %2344 }
0x19a0   :  { %v1311_v42 = vmul.f32 0.5, %v2345_v41 }
0x19a2   :  { %v1312_v43 = vadd.f32 0.5, %v1311_v42 }
0x19a4   :  { %v1313_v44 = vsel %vm2575_vm5, %v2345_v41, %v1312_v43 }
0x19a5   :  { %1319 = vrot.lane.b32.xlu1 %v1313_v44, %s2444_s3  ;;  %v1317_v48 = vmul.f32 %v1315_v47, %v1313_v44 }
0x1a17   :  { %v1320_v45 = vpop.permute.xlu1 %1319 }
0x1a18   :  { %v1322_v46 = vmul.f32 %v1320_v45, %v1313_v44 }
0x1a1a   :  { %1324 = vrot.lane.b32.xlu0 %v1322_v46, %s2445_s15 }
0x1a8c   :  { %v1325_v49 = vpop.permute.xlu0 %1324 }
0x1a8d   :  { %v1327_v50 = vadd.f32 %v1325_v49, %v1317_v48 }
0x1a8f   :  { %2346 = vtanh.f32 %v1327_v50  ;;  %v1420_v2 = vrot.slane %v1327_v50, 6 }
0x1a9c   :  { %v2347_v51 = vpop.eup %2346 }
0x1a9d   :  { %1330 = vrot.lane.b32.xlu1 %v2347_v51, %s2444_s3 }
0x1b0f   :  { %v1331_v13 = vpop.permute.xlu1 %1330 }
0x1b10   :  { %v1333_v52 = vmul.f32 %v1331_v13, %v1313_v44 }
0x1b12   :  { %v1335_v54 = vrot.slane %v1333_v52, 2 }
0x1b14   :  { %1336 = vrot.lane.b32.xlu0 %v1335_v54, %s2445_s15 }
0x1b86   :  { %v1337_v55 = vpop.permute.xlu0 %1336 }
0x1b87   :  { %2240 = vmatmul.mubr.msk.f32.vlgmr.msra.gmra.mxu0 %vm179_vm7, %v1337_v55 }
0x1b88   :  { %2254 = vmatpush3.msra.mxu0 %v2730_v60  ;;  %2261 = vmatprep.mubr.msk.f32.mxu0 %vm2442_vm0, %v2441_v1 }
0x1b89   :  { %2255 = vmatprep.subr.mxu0 %v2441_v1 }
0x1b8a   :  { %2256 = vmatpush3.msra.mxu0 %v2733_v61 }
0x1b8b   :  { %2257 = vmatprep.subr.mxu0 %v2441_v1 }
0x1b8c   :  { %2258 = vmatpush3.msra.mxu0 %v2736_v62 }
0x1b8d   :  { %2259 = vmatprep.subr.mxu0 %v2441_v1 }
0x1b8e   :  { %2260 = vmatpush3.msra.mxu0 %v2742_v63 }
0x1b8f   :  { %2275 = vmatprep.subr.mxu0 %v2441_v1 }
0x1c47   :  { %v1406_v56 = vpop.f32.mrf.mxu0 }
0x1c48   :  { %v1411_v57 = vrot.slane %v1406_v56, 4 }
0x1c49   :  { %v2241_v53 = vpop.f32.mrf.mxu0 }
0x1c4a   :  { %v1413_v37 = vadd.f32 %v1411_v57, %v2779_v20 }
0x1c4c   :  { %v1414_v58 = vmul.f32 %v1413_v37, %v2581_v18 }
0x1c4e   :  { %2348 = vtanh.f32 %v1414_v58 }
0x1c5b   :  { %v2349_v59 = vpop.eup %2348 }
0x1c5c   :  { %v1416_v3 = vmul.f32 0.5, %v2349_v59 }
0x1c5e   :  { %v1417_v17 = vadd.f32 0.5, %v1416_v3 }
0x1c60   :  { %v1418_v6 = vsel %vm2575_vm5, %v2349_v59, %v1417_v17 }
0x1c61   :  { %1424 = vrot.lane.b32.xlu1 %v1418_v6, %s2444_s3  ;;  %v1422_v8 = vmul.f32 %v1420_v2, %v1418_v6 }
0x1cd3   :  { %v1425_v0 = vpop.permute.xlu1 %1424 }
0x1cd4   :  { %v1427_v7 = vmul.f32 %v1425_v0, %v1418_v6 }
0x1cd6   :  { %1429 = vrot.lane.b32.xlu0 %v1427_v7, %s2445_s15 }
0x1d48   :  { %v1430_v4 = vpop.permute.xlu0 %1429 }
0x1d49   :  { %v1432_v5 = vadd.f32 %v1430_v4, %v1422_v8 }
0x1d4b   :  { %2350 = vtanh.f32 %v1432_v5  ;;  %v1525_v32 = vrot.slane %v1432_v5, 6 }
0x1d58   :  { %v2351_v9 = vpop.eup %2350 }
0x1d59   :  { %1435 = vrot.lane.b32.xlu1 %v2351_v9, %s2444_s3 }
0x1dcb   :  { %v1436_v10 = vpop.permute.xlu1 %1435 }
0x1dcc   :  { %v1438_v11 = vmul.f32 %v1436_v10, %v1418_v6 }
0x1dce   :  { %v1440_v12 = vrot.slane %v1438_v11, 4 }
0x1dd0   :  { %1441 = vrot.lane.b32.xlu0 %v1440_v12, %s2445_s15 }
0x1e42   :  { %v1442_v19 = vpop.permute.xlu0 %1441 }
0x1e43   :  { %2251 = vmatmul.mubr.msk.f32.vlgmr.msra.gmra.mxu1 %vm179_vm7, %v1442_v19 }
0x1e44   :  { %2265 = vmatpush3.msra.mxu1 %v2730_v60  ;;  %2272 = vmatprep.mubr.msk.f32.mxu1 %vm2442_vm0, %v2441_v1 }
0x1e45   :  { %2266 = vmatprep.subr.mxu1 %v2441_v1 }
0x1e46   :  { %2267 = vmatpush3.msra.mxu1 %v2733_v61 }
0x1e47   :  { %2268 = vmatprep.subr.mxu1 %v2441_v1 }
0x1e48   :  { %2269 = vmatpush3.msra.mxu1 %v2736_v62 }
0x1e49   :  { %2270 = vmatprep.subr.mxu1 %v2441_v1 }
0x1e4a   :  { %2271 = vmatpush3.msra.mxu1 %v2742_v63 }
0x1e4b   :  { %2286 = vmatprep.subr.mxu1 %v2441_v1 }
0x1f03   :  { %v1511_v21 = vpop.f32.mrf.mxu1 }
0x1f04   :  { %v1516_v22 = vrot.slane %v1511_v21, 2 }
0x1f05   :  { %v2252_v23 = vpop.f32.mrf.mxu1 }
0x1f06   :  { %v1518_v24 = vadd.f32 %v1516_v22, %v2779_v20 }
0x1f08   :  { %v1519_v25 = vmul.f32 %v1518_v24, %v2581_v18 }
0x1f0a   :  { %2352 = vtanh.f32 %v1519_v25 }
0x1f17   :  { %v2353_v26 = vpop.eup %2352 }
0x1f18   :  { %v1521_v27 = vmul.f32 0.5, %v2353_v26 }
0x1f1a   :  { %v1522_v28 = vadd.f32 0.5, %v1521_v27 }
0x1f1c   :  { %v1523_v29 = vsel %vm2575_vm5, %v2353_v26, %v1522_v28 }
0x1f1d   :  { %1529 = vrot.lane.b32.xlu1 %v1523_v29, %s2444_s3  ;;  %v1527_v33 = vmul.f32 %v1525_v32, %v1523_v29 }
0x1f8f   :  { %v1530_v30 = vpop.permute.xlu1 %1529 }
0x1f90   :  { %v1532_v31 = vmul.f32 %v1530_v30, %v1523_v29 }
0x1f92   :  { %1534 = vrot.lane.b32.xlu0 %v1532_v31, %s2445_s15 }
0x2004   :  { %v1535_v34 = vpop.permute.xlu0 %1534 }
0x2005   :  { %v1537_v35 = vadd.f32 %v1535_v34, %v1527_v33 }
0x2007   :  { %2354 = vtanh.f32 %v1537_v35  ;;  %v1627_v50 = vrot.slane %v1537_v35, 6 }
0x2014   :  { %v2355_v20 = vpop.eup %2354 }
0x2015   :  { %1540 = vrot.lane.b32.xlu1 %v2355_v20, %s2444_s3 }
0x2087   :  { %v1541_v15 = vpop.permute.xlu1 %1540 }
0x2088   :  { %v1543_v36 = vmul.f32 %v1541_v15, %v1523_v29 }
0x208a   :  { %v1545_v38 = vrot.slane %v1543_v36, 6 }
0x208c   :  { %1546 = vrot.lane.b32.xlu0 %v1545_v38, %s2445_s15 }
0x20fe   :  { %v1547_v39 = vpop.permute.xlu0 %1546 }
0x20ff   :  { %2262 = vmatmul.mubr.msk.f32.vlgmr.msra.gmra.mxu0 %vm179_vm7, %v1547_v39 }
0x2100   :  { %2276 = vmatpush3.msra.mxu0 %v2730_v60  ;;  %2283 = vmatprep.mubr.msk.f32.mxu0 %vm2442_vm0, %v2441_v1 }
0x2101   :  { %2277 = vmatprep.subr.mxu0 %v2441_v1 }
0x2102   :  { %2278 = vmatpush3.msra.mxu0 %v2733_v61 }
0x2103   :  { %2279 = vmatprep.subr.mxu0 %v2441_v1 }
0x2104   :  { %2280 = vmatpush3.msra.mxu0 %v2736_v62 }
0x2105   :  { %2281 = vmatprep.subr.mxu0 %v2441_v1 }
0x2106   :  { %2282 = vmatpush3.msra.mxu0 %v2742_v63 }
0x21bf   :  { %v1616_v40 = vpop.f32.mrf.mxu0 }
0x21c0   :  { %v1620_v41 = vadd.f32 %v1616_v40, %v2777_v14 }
0x21c1   :  { %v2263_v42 = vpop.f32.mrf.mxu0 }
0x21c2   :  { %v1621_v43 = vmul.f32 %v1620_v41, %v2581_v18 }
0x21c4   :  { %2356 = vtanh.f32 %v1621_v43 }
0x21d1   :  { %v2357_v44 = vpop.eup %2356 }
0x21d2   :  { %v1623_v45 = vmul.f32 0.5, %v2357_v44 }
0x21d4   :  { %v1624_v46 = vadd.f32 0.5, %v1623_v45 }
0x21d6   :  { %v1625_v47 = vsel %vm2575_vm5, %v2357_v44, %v1624_v46 }
0x21d7   :  { %1631 = vrot.lane.b32.xlu1 %v1625_v47, %s2444_s3  ;;  %v1629_v51 = vmul.f32 %v1627_v50, %v1625_v47 }
0x2249   :  { %v1632_v48 = vpop.permute.xlu1 %1631 }
0x224a   :  { %v1634_v49 = vmul.f32 %v1632_v48, %v1625_v47  ;;  %v2014_v48 = vld [vmem:[%s2914_s7] ss:$0 sm:$0xff] }
0x224c   :  { %1636 = vrot.lane.b32.xlu0 %v1634_v49, %s2445_s15 }
0x22be   :  { %v1637_v13 = vpop.permute.xlu0 %1636 }
0x22bf   :  { %v1639_v52 = vadd.f32 %v1637_v13, %v1629_v51 }
0x22c1   :  { %2358 = vtanh.f32 %v1639_v52 }
0x22ce   :  { %v2359_v54 = vpop.eup %2358 }
0x22cf   :  { %1642 = vrot.lane.b32.xlu1 %v2359_v54, %s2444_s3 }
0x2341   :  { %v1643_v55 = vpop.permute.xlu1 %1642 }
0x2342   :  { %v1645_v56 = vmul.f32 %v1643_v55, %v1625_v47 }
0x2344   :  { %1647 = vrot.lane.b32.xlu0 %v1645_v56, %s2445_s15 }
0x23b6   :  { %v1648_v57 = vpop.permute.xlu0 %1647 }
0x23b7   :  { %2273 = vmatmul.mubr.msk.f32.vlgmr.msra.gmra.mxu1 %vm179_vm7, %v1648_v57  ;;  %v2015_v57 = vld [vmem:[#allocation3] ss:$0 sm:$0xff] }
0x23b8   :  { %2287 = vmatpush3.msra.mxu1 %v2730_v60  ;;  %2294 = vmatprep.mubr.msk.f32.mxu1 %vm2442_vm0, %v2441_v1 }
0x23b9   :  { %2288 = vmatprep.subr.mxu1 %v2441_v1 }
0x23ba   :  { %2289 = vmatpush3.msra.mxu1 %v2733_v61 }
0x23bb   :  { %2290 = vmatprep.subr.mxu1 %v2441_v1 }
0x23bc   :  { %2291 = vmatpush3.msra.mxu1 %v2736_v62 }
0x23bd   :  { %2292 = vmatprep.subr.mxu1 %v2441_v1 }
0x23be   :  { %2293 = vmatpush3.msra.mxu1 %v2742_v63  ;;  %v1731_v63 = vrot.slane %v1639_v52, 6 }
0x2477   :  { %v1717_v53 = vpop.f32.mrf.mxu1 }
0x2478   :  { %v1722_v37 = vrot.slane %v1717_v53, 6 }
0x2479   :  { %v2274_v58 = vpop.f32.mrf.mxu1 }
0x247a   :  { %v1724_v60 = vadd.f32 %v1722_v37, %v2777_v14 }
0x247c   :  { %v1725_v59 = vmul.f32 %v1724_v60, %v2581_v18 }
0x247e   :  { %2360 = vtanh.f32 %v1725_v59 }
0x248b   :  { %v2361_v3 = vpop.eup %2360 }
0x248c   :  { %v1727_v17 = vmul.f32 0.5, %v2361_v3 }
0x248e   :  { %v1728_v6 = vadd.f32 0.5, %v1727_v17 }
0x2490   :  { %v1729_v61 = vsel %vm2575_vm5, %v2361_v3, %v1728_v6 }
0x2491   :  { %1735 = vrot.lane.b32.xlu1 %v1729_v61, %s2444_s3  ;;  %v1733_v0 = vmul.f32 %v1731_v63, %v1729_v61 }
0x2503   :  { %v1736_v62 = vpop.permute.xlu1 %1735 }
0x2504   :  { %v1738_v1 = vmul.f32 %v1736_v62, %v1729_v61 }
0x2506   :  { %1740 = vrot.lane.b32.xlu0 %v1738_v1, %s2445_s15 }
0x2578   :  { %v1741_v7 = vpop.permute.xlu0 %1740 }
0x2579   :  { %v1743_v2 = vadd.f32 %v1741_v7, %v1733_v0 }
0x257b   :  { %2362 = vtanh.f32 %v1743_v2  ;;  %v1836_v29 = vrot.slane %v1743_v2, 6 }
0x2588   :  { %v2363_v8 = vpop.eup %2362 }
0x2589   :  { %1746 = vrot.lane.b32.xlu1 %v2363_v8, %s2444_s3 }
0x25fb   :  { %v1747_v4 = vpop.permute.xlu1 %1746 }
0x25fc   :  { %v1749_v5 = vmul.f32 %v1747_v4, %v1729_v61 }
0x25fe   :  { %v1751_v9 = vrot.slane %v1749_v5, 2 }
0x2600   :  { %1752 = vrot.lane.b32.xlu0 %v1751_v9, %s2445_s15 }
0x2672   :  { %v1753_v10 = vpop.permute.xlu0 %1752 }
0x2673   :  { %2284 = vmatmul.mubr.msk.f32.vlgmr.msra.gmra.mxu0 %vm179_vm7, %v1753_v10 }
0x2733   :  { %v1822_v11 = vpop.f32.mrf.mxu0 }
0x2734   :  { %v1827_v12 = vrot.slane %v1822_v11, 4 }
0x2735   :  { %v2285_v19 = vpop.f32.mrf.mxu0 }
0x2736   :  { %v1829_v21 = vadd.f32 %v1827_v12, %v2777_v14 }
0x2738   :  { %v1830_v22 = vmul.f32 %v1829_v21, %v2581_v18 }
0x273a   :  { %2364 = vtanh.f32 %v1830_v22 }
0x2747   :  { %v2365_v23 = vpop.eup %2364 }
0x2748   :  { %v1832_v24 = vmul.f32 0.5, %v2365_v23 }
0x274a   :  { %v1833_v25 = vadd.f32 0.5, %v1832_v24 }
0x274c   :  { %v1834_v26 = vsel %vm2575_vm5, %v2365_v23, %v1833_v25 }
0x274d   :  { %1840 = vrot.lane.b32.xlu1 %v1834_v26, %s2444_s3  ;;  %v1838_v30 = vmul.f32 %v1836_v29, %v1834_v26 }
0x27bf   :  { %v1841_v27 = vpop.permute.xlu1 %1840 }
0x27c0   :  { %v1843_v28 = vmul.f32 %v1841_v27, %v1834_v26 }
0x27c2   :  { %1845 = vrot.lane.b32.xlu0 %v1843_v28, %s2445_s15 }
0x2834   :  { %v1846_v31 = vpop.permute.xlu0 %1845 }
0x2835   :  { %v1848_v32 = vadd.f32 %v1846_v31, %v1838_v30 }
0x2837   :  { %2366 = vtanh.f32 %v1848_v32 }
0x2844   :  { %v2367_v33 = vpop.eup %2366 }
0x2845   :  { %1851 = vrot.lane.b32.xlu1 %v2367_v33, %s2444_s3 }
0x28b7   :  { %v1852_v34 = vpop.permute.xlu1 %1851 }
0x28b8   :  { %v1854_v35 = vmul.f32 %v1852_v34, %v1834_v26 }
0x28ba   :  { %v1856_v20 = vrot.slane %v1854_v35, 4 }
0x28bc   :  { %1857 = vrot.lane.b32.xlu0 %v1856_v20, %s2445_s15 }
0x292e   :  { %v1858_v15 = vpop.permute.xlu0 %1857 }
0x292f   :  { %2295 = vmatmul.mubr.msk.f32.vlgmr.msra.gmra.mxu1 %vm179_vm7, %v1858_v15 }
0x29ef   :  { %v1927_v36 = vpop.f32.mrf.mxu1 }
0x29f0   :  { %v1932_v38 = vrot.slane %v1927_v36, 2 }
0x29f1   :  { %v2296_v39 = vpop.f32.mrf.mxu1 }
0x29f2   :  { %v1934_v40 = vadd.f32 %v1932_v38, %v2777_v14 }
0x29f4   :  { %v1935_v41 = vmul.f32 %v1934_v40, %v2581_v18  ;;  %v1941_v18 = vrot.slane %v1848_v32, 6 }
0x29f6   :  { %2368 = vtanh.f32 %v1935_v41 }
0x2a03   :  { %v2369_v42 = vpop.eup %2368 }
0x2a04   :  { %v1937_v43 = vmul.f32 0.5, %v2369_v42 }
0x2a06   :  { %v1938_v44 = vadd.f32 0.5, %v1937_v43 }
0x2a08   :  { %v1939_v45 = vsel %vm2575_vm5, %v2369_v42, %v1938_v44 }
0x2a09   :  { %1945 = vrot.lane.b32.xlu1 %v1939_v45, %s2444_s3  ;;  %v1943_v14 = vmul.f32 %v1941_v18, %v1939_v45 }
0x2a7b   :  { %v1946_v46 = vpop.permute.xlu1 %1945 }
0x2a7c   :  { %v1948_v47 = vmul.f32 %v1946_v46, %v1939_v45 }
0x2a7e   :  { %1950 = vrot.lane.b32.xlu0 %v1948_v47, %s2445_s15 }
0x2a82   :  { %1966 = vrot.lane.b32.xlu0 %v2014_v48, %s2446_s18 }
0x2af0   :  { %v1951_v49 = vpop.permute.xlu0 %1950 }
0x2af1   :  { %v1953_v50 = vadd.f32 %v1951_v49, %v1943_v14 }
0x2af3   :  { %2370 = vtanh.f32 %v1953_v50 }
0x2af4   :  { %v1967_v13 = vpop.permute.xlu0 %1966 }
0x2b00   :  { %v2371_v51 = vpop.eup %2370 }
0x2b01   :  { %1956 = vrot.lane.b32.xlu1 %v2371_v51, %s2444_s3 }
0x2b73   :  { %v1957_v16 = vpop.permute.xlu1 %1956 }
0x2b74   :  { %v1959_v52 = vmul.f32 %v1957_v16, %v1939_v45 }
0x2b76   :  { %v1969_v54 = vmul.f32 %v1967_v13, %v1959_v52 }
0x2b78   :  { %1971 = vrot.lane.b32.xlu1 %v1969_v54, %s2445_s15 }
0x2bea   :  { %v1972_v55 = vpop.permute.xlu1 %1971 }
0x2beb   :  { %v1974_v56 = vsel %vm607_vm9, %v1972_v55, 0.0 }
0x2bec   :  { %1975 = vadd.xlane.f32.xlu0 %v1974_v56 }
0x2c75   :  { %v1976_v53 = vpop.xlane.xlu0 %1975 }
0x2c76   :  { %v1984_v37 = vadd.f32 %v2015_v57, %v1976_v53 }
0x2c78   :  { %1986 = vst.msk [vmem:[%s2916_s9 - $0x6] sm:$0xc0] %vm1985_vm11, %v1984_v37 }
0x2c79   :  { %1991 = vsyncpa [#allocation5], 1 }
0x2c7a   :  { %1992 = vsyncpa [#allocation7], 1 }

</bundles_post_ra>
